<compile_context>
chip_gen: v6e
topology: v6e:2x2x1
jax: 0.10.0
libtpu: 0.0.40
codegen_flags: <defaults>
</compile_context>

<pallas_src>
import jax
import jax.numpy as jnp
from jax.experimental import pallas as pl
from jax.experimental.pallas import tpu as pltpu

SAMPLES_PER_ROW = 16   # 16 samples x 8 features = 128 lanes
ROW_LANES = 128


def mlp_kernel(x_ref, w1_ref, b1_ref, w2_ref, b2_ref, w3_ref, b3_ref, o_ref):
    hi = jax.lax.Precision.HIGHEST
    x = x_ref[...]                                                     # (TR, 128)
    h = jnp.dot(x, w1_ref[...], preferred_element_type=jnp.float32,
                precision=hi) + b1_ref[...]
    h = jnp.maximum(h, 0.0)                                            # (TR, 128)
    h = jnp.dot(h, w2_ref[...], preferred_element_type=jnp.float32,
                precision=hi) + b2_ref[...]
    h = jnp.maximum(h, 0.0)                                            # (TR, 128)
    h = jnp.dot(h, w3_ref[...], preferred_element_type=jnp.float32,
                precision=hi) + b3_ref[...]
    o_ref[...] = jnp.maximum(h, 0.0).astype(o_ref.dtype)               # (TR, 16)


def _expand_params(params):
    """One-time expansion of torch-style (out,in) weights into block-diagonal,
    MXU-friendly operands (runs in the wrapper, outside the kernel)."""
    w1, b1 = params["w1"], params["b1"]          # (6,8), (6,)
    w2, b2 = params["w2"], params["b2"]          # (4,6), (4,)
    w3, b3 = params["w3"], params["b3"]          # (1,4), (1,)
    eye = jnp.eye(SAMPLES_PER_ROW, dtype=jnp.float32)

    blk1 = jnp.zeros((8, 8), jnp.float32).at[:, :6].set(w1.T)
    w1_bd = jnp.kron(eye, blk1)                                        # (128,128)
    b1_r = jnp.tile(jnp.pad(b1, (0, 2)), SAMPLES_PER_ROW)[None]        # (1,128)

    blk2 = jnp.zeros((8, 8), jnp.float32).at[:6, :4].set(w2.T)
    w2_bd = jnp.kron(eye, blk2)                                        # (128,128)
    b2_r = jnp.tile(jnp.pad(b2, (0, 4)), SAMPLES_PER_ROW)[None]        # (1,128)

    blk3 = jnp.zeros((8, 1), jnp.float32).at[:4, 0].set(w3[0])
    w3_c = jnp.kron(eye, blk3)                                         # (128,16)
    b3_r = jnp.tile(b3, SAMPLES_PER_ROW)[None]                         # (1,16)
    return w1_bd, b1_r, w2_bd, b2_r, w3_c, b3_r


def _pick_tile_rows(rows, tile_rows):
    if rows <= 8:
        return rows                       # single tiny block (== full dim)
    tr = min(tile_rows, rows)
    if tr == rows:
        tr = pl.cdiv(rows, 2)             # >= 2 grid steps -> both v7x TCs busy
    return pl.cdiv(tr, 8) * 8             # sublane-aligned


def mlp_forward(x, params, *, tile_rows=8192):
    """x: (N, 8) float32 -> (N, 1) float32.

    tile_rows: rows (16 samples / 128 lanes each) per grid step. Default 8192
    = 4 MiB f32 input block (131072 samples/step)."""
    n, in_f = x.shape
    assert in_f == 8
    n_pad = pl.cdiv(n, SAMPLES_PER_ROW) * SAMPLES_PER_ROW
    if n_pad != n:                         # only pad non-multiple-of-16 batches
        x = jnp.pad(x, ((0, n_pad - n), (0, 0)))
    rows = n_pad // SAMPLES_PER_ROW
    xr = x.reshape(rows, ROW_LANES)        # row-major contiguous -> free reshape

    w1_bd, b1_r, w2_bd, b2_r, w3_c, b3_r = _expand_params(params)

    tr = _pick_tile_rows(rows, tile_rows)
    grid = (pl.cdiv(rows, tr),)            # last block may be ragged; rows are
                                           # independent, OOB writes are masked

    resident = lambda a: pl.BlockSpec(a.shape, lambda i: (0, 0))

    out = pl.pallas_call(
        mlp_kernel,
        out_shape=jax.ShapeDtypeStruct((rows, SAMPLES_PER_ROW), jnp.float32),
        grid=grid,
        in_specs=[
            pl.BlockSpec((tr, ROW_LANES), lambda i: (i, 0)),           # x tile
            resident(w1_bd), resident(b1_r),
            resident(w2_bd), resident(b2_r),
            resident(w3_c), resident(b3_r),
        ],
        out_specs=pl.BlockSpec((tr, SAMPLES_PER_ROW), lambda i: (i, 0)),
        compiler_params=pltpu.CompilerParams(
            dimension_semantics=("parallel",)),
    )(xr, w1_bd, b1_r, w2_bd, b2_r, w3_c, b3_r)

    # (rows,16) lane-packed slab -> (N,1): drop tail padding, restore torch shape.
    return out.reshape(-1)[:n].reshape(n, 1)


def init_params(key):
    """Deterministic init matching torch.nn.Linear (uniform +/- 1/sqrt(fan_in))."""
    ks = jax.random.split(key, 6)

    def lin(kw, kb, out_f, in_f):
        bound = 1.0 / jnp.sqrt(in_f)
        w = jax.random.uniform(kw, (out_f, in_f), jnp.float32, -bound, bound)
        b = jax.random.uniform(kb, (out_f,), jnp.float32, -bound, bound)
        return w, b

    w1, b1 = lin(ks[0], ks[1], 6, 8)
    w2, b2 = lin(ks[2], ks[3], 4, 6)
    w3, b3 = lin(ks[4], ks[5], 1, 4)
    return {"w1": w1, "b1": b1, "w2": w2, "b2": b2, "w3": w3, "b3": b3}


if __name__ == "__main__":
    key = jax.random.PRNGKey(0)
    k_x, k_x2, k_p = jax.random.split(key, 3)

    params = init_params(k_p)

    relu = lambda v: jnp.maximum(v, 0.0)

    def ref_forward(xx):
        h = relu(xx @ params["w1"].T + params["b1"])
        h = relu(h @ params["w2"].T + params["b2"])
        return relu(h @ params["w3"].T + params["b3"])

    # Small batch: one 128-lane row, single grid step.
    x = jax.random.normal(k_x, (8, 8), jnp.float32)
    y = mlp_forward(x, params)
    jax.block_until_ready(y)
    assert y.shape == (8, 1)
    assert jnp.allclose(y, ref_forward(x), atol=1e-5, rtol=1e-5)

    # Larger ragged batch: tail padding to 16, multi-step grid, ragged last block.
    x2 = jax.random.normal(k_x2, (1000, 8), jnp.float32)
    y2 = mlp_forward(x2, params, tile_rows=16)
    jax.block_until_ready(y2)
    assert y2.shape == (1000, 1)
    assert jnp.allclose(y2, ref_forward(x2), atol=1e-5, rtol=1e-5)

    print("KERNEL_OK")
</pallas_src>

<mosaic_0001>
module attributes {stable_mosaic.version = 11 : i64} {
  func.func @mlp_kernel(%arg0: i32, %arg1: memref<1x128xf32, #tpu.memory_space<vmem>>, %arg2: memref<128x128xf32, #tpu.memory_space<vmem>>, %arg3: memref<1x128xf32, #tpu.memory_space<vmem>>, %arg4: memref<128x128xf32, #tpu.memory_space<vmem>>, %arg5: memref<1x128xf32, #tpu.memory_space<vmem>>, %arg6: memref<128x16xf32, #tpu.memory_space<vmem>>, %arg7: memref<1x16xf32, #tpu.memory_space<vmem>>, %arg8: memref<1x16xf32, #tpu.memory_space<vmem>>) attributes {dimension_semantics = [#tpu.dimension_semantics<parallel>], iteration_bounds = array<i64: 1>, scalar_prefetch = 0 : i64, scratch_operands = 0 : i64, tpu.core_type = #tpu.core_type<tc>, window_params = [{transform_indices = @transform_0, window_bounds = array<i64: 1, 128>}, {pipeline_mode = #tpu.pipeline_mode<synchronous>, transform_indices = @transform_1, window_bounds = array<i64: 128, 128>}, {pipeline_mode = #tpu.pipeline_mode<synchronous>, transform_indices = @transform_2, window_bounds = array<i64: 1, 128>}, {pipeline_mode = #tpu.pipeline_mode<synchronous>, transform_indices = @transform_3, window_bounds = array<i64: 128, 128>}, {pipeline_mode = #tpu.pipeline_mode<synchronous>, transform_indices = @transform_4, window_bounds = array<i64: 1, 128>}, {pipeline_mode = #tpu.pipeline_mode<synchronous>, transform_indices = @transform_5, window_bounds = array<i64: 128, 16>}, {pipeline_mode = #tpu.pipeline_mode<synchronous>, transform_indices = @transform_6, window_bounds = array<i64: 1, 16>}, {transform_indices = @transform_7, window_bounds = array<i64: 1, 16>}]} {
    %c0 = arith.constant 0 : index
    %c0_0 = arith.constant 0 : index
    %0 = vector.load %arg1[%c0, %c0_0] : memref<1x128xf32, #tpu.memory_space<vmem>>, vector<1x128xf32>
    %c0_1 = arith.constant 0 : index
    %c0_2 = arith.constant 0 : index
    %1 = vector.load %arg2[%c0_1, %c0_2] : memref<128x128xf32, #tpu.memory_space<vmem>>, vector<128x128xf32>
    %cst = arith.constant dense<0.000000e+00> : vector<1x128xf32>
    %2 = tpu.matmul %0, %1, %cst {dimension_numbers = #tpu.dot_dimension_numbers<[1], [0], [0], [1], [0, 0, 1, 1], [], []>, precision = #tpu.contract_precision<fp32>} : vector<1x128xf32>, vector<128x128xf32>, vector<1x128xf32> -> vector<1x128xf32>
    %c0_3 = arith.constant 0 : index
    %c0_4 = arith.constant 0 : index
    %3 = vector.load %arg3[%c0_3, %c0_4] : memref<1x128xf32, #tpu.memory_space<vmem>>, vector<1x128xf32>
    %4 = arith.addf %2, %3 : vector<1x128xf32>
    %cst_5 = arith.constant 0.000000e+00 : f32
    %5 = vector.broadcast %cst_5 : f32 to vector<1x128xf32>
    %6 = arith.maximumf %4, %5 : vector<1x128xf32>
    %c0_6 = arith.constant 0 : index
    %c0_7 = arith.constant 0 : index
    %7 = vector.load %arg4[%c0_6, %c0_7] : memref<128x128xf32, #tpu.memory_space<vmem>>, vector<128x128xf32>
    %cst_8 = arith.constant dense<0.000000e+00> : vector<1x128xf32>
    %8 = tpu.matmul %6, %7, %cst_8 {dimension_numbers = #tpu.dot_dimension_numbers<[1], [0], [0], [1], [0, 0, 1, 1], [], []>, precision = #tpu.contract_precision<fp32>} : vector<1x128xf32>, vector<128x128xf32>, vector<1x128xf32> -> vector<1x128xf32>
    %c0_9 = arith.constant 0 : index
    %c0_10 = arith.constant 0 : index
    %9 = vector.load %arg5[%c0_9, %c0_10] : memref<1x128xf32, #tpu.memory_space<vmem>>, vector<1x128xf32>
    %10 = arith.addf %8, %9 : vector<1x128xf32>
    %cst_11 = arith.constant 0.000000e+00 : f32
    %11 = vector.broadcast %cst_11 : f32 to vector<1x128xf32>
    %12 = arith.maximumf %10, %11 : vector<1x128xf32>
    %c0_12 = arith.constant 0 : index
    %c0_13 = arith.constant 0 : index
    %13 = vector.load %arg6[%c0_12, %c0_13] : memref<128x16xf32, #tpu.memory_space<vmem>>, vector<128x16xf32>
    %cst_14 = arith.constant dense<0.000000e+00> : vector<1x16xf32>
    %14 = tpu.matmul %12, %13, %cst_14 {dimension_numbers = #tpu.dot_dimension_numbers<[1], [0], [0], [1], [0, 0, 1, 1], [], []>, precision = #tpu.contract_precision<fp32>} : vector<1x128xf32>, vector<128x16xf32>, vector<1x16xf32> -> vector<1x16xf32>
    %c0_15 = arith.constant 0 : index
    %c0_16 = arith.constant 0 : index
    %15 = vector.load %arg7[%c0_15, %c0_16] : memref<1x16xf32, #tpu.memory_space<vmem>>, vector<1x16xf32>
    %16 = arith.addf %14, %15 : vector<1x16xf32>
    %cst_17 = arith.constant 0.000000e+00 : f32
    %17 = vector.broadcast %cst_17 : f32 to vector<1x16xf32>
    %18 = arith.maximumf %16, %17 : vector<1x16xf32>
    %c0_18 = arith.constant 0 : index
    %c0_19 = arith.constant 0 : index
    %19 = vector.load %arg8[%c0_18, %c0_19] : memref<1x16xf32, #tpu.memory_space<vmem>>, vector<1x16xf32>
    tpu.vector_store %arg8[%c0_18, %c0_19], %18 {strides = array<i32>} : memref<1x16xf32, #tpu.memory_space<vmem>>, vector<1x16xf32>,
    return
  }
  func.func @transform_0(%arg0: i32) -> (i32, i32) {
    %c0_i32 = arith.constant 0 : i32
    %c0_i32_0 = arith.constant 0 : i32
    return %arg0, %c0_i32 : i32, i32
  }
  func.func @transform_1(%arg0: i32) -> (i32, i32) {
    %c0_i32 = arith.constant 0 : i32
    %c0_i32_0 = arith.constant 0 : i32
    %c0_i32_1 = arith.constant 0 : i32
    return %c0_i32, %c0_i32_0 : i32, i32
  }
  func.func @transform_2(%arg0: i32) -> (i32, i32) {
    %c0_i32 = arith.constant 0 : i32
    %c0_i32_0 = arith.constant 0 : i32
    %c0_i32_1 = arith.constant 0 : i32
    return %c0_i32, %c0_i32_0 : i32, i32
  }
  func.func @transform_3(%arg0: i32) -> (i32, i32) {
    %c0_i32 = arith.constant 0 : i32
    %c0_i32_0 = arith.constant 0 : i32
    %c0_i32_1 = arith.constant 0 : i32
    return %c0_i32, %c0_i32_0 : i32, i32
  }
  func.func @transform_4(%arg0: i32) -> (i32, i32) {
    %c0_i32 = arith.constant 0 : i32
    %c0_i32_0 = arith.constant 0 : i32
    %c0_i32_1 = arith.constant 0 : i32
    return %c0_i32, %c0_i32_0 : i32, i32
  }
  func.func @transform_5(%arg0: i32) -> (i32, i32) {
    %c0_i32 = arith.constant 0 : i32
    %c0_i32_0 = arith.constant 0 : i32
    %c0_i32_1 = arith.constant 0 : i32
    return %c0_i32, %c0_i32_0 : i32, i32
  }
  func.func @transform_6(%arg0: i32) -> (i32, i32) {
    %c0_i32 = arith.constant 0 : i32
    %c0_i32_0 = arith.constant 0 : i32
    %c0_i32_1 = arith.constant 0 : i32
    return %c0_i32, %c0_i32_0 : i32, i32
  }
  func.func @transform_7(%arg0: i32) -> (i32, i32) {
    %c0_i32 = arith.constant 0 : i32
    %c0_i32_0 = arith.constant 0 : i32
    return %arg0, %c0_i32 : i32, i32
  }
}

</mosaic_0001>

<bundles_post_ra>
// kernel: tpu_custom_call.1
= control target key start
LH: loop header
LB: loop body
LE: loop exit
PB: predicated region body
PF: predicated region fallthrough
CT: control target
= control target key end

     0   :  { %12 = vsyncpa [#allocation3], 0  ;;  %s4263_s0 = inlined_call_operand.vmem [shape: f32[1,128], index: 0, kind: input, shape index: {}]   ;;  %s4264_s1 = inlined_call_operand.vmem [shape: f32[128,128], index: 1, kind: input, shape index: {}]   ;;  %s4265_s2 = inlined_call_operand.vmem [shape: f32[1,128], index: 2, kind: input, shape index: {}]   ;;  %s4266_s3 = inlined_call_operand.hbm [shape: f32[128,128], index: 3, kind: input, shape index: {}]   ;;  %s4267_s4 = inlined_call_operand.vmem [shape: f32[1,128], index: 4, kind: input, shape index: {}]   ;;  %s4268_s5 = inlined_call_operand.vmem [shape: f32[128,16], index: 5, kind: input, shape index: {}]   ;;  %s4269_s6 = inlined_call_operand.vmem [shape: f32[1,16], index: 6, kind: input, shape index: {}]   ;;  %s4270_s7 = inlined_call_operand.hbm [shape: f32[1,16], index: 7, kind: output, shape index: {}]  }
   0x1   :  { %13 = vsyncpa [#allocation4], 0  ;;  %s3022_s24 = smov [#allocation2]  }
   0x2   :  { %s25_s25 = sshll.u32 %s3022_s24, 4  ;;  %s26_s25 = int_to_ptr.vmem [resolvable:$true] %s25_s25 }
   0x3   :  { %s2986_s26 = scalar_lea.vmem %s26_s25, 2048  ;;  %p2991_p1 = scmp.lt.s32.totalorder %s26_s25, %s26_s25 }
   0x4   :  { %p2987_p0 = scmp.ne.s32.totalorder %s26_s25, %s2986_s26  ;;  %p2992_p2 = scmp.lt.s32.totalorder %s2986_s26, %s2986_s26 }
   0x6   :  { %p2993_p3 = por %p2992_p2, %p2991_p1 }
   0x8   :  { %p2994_p4 = pnand %p2993_p3, %p2987_p0 }
   0xa   :  { %2997 = shalt.err (!%p2994_p4)
}
   0xb   :  { %s3023_s27 = smov 128   ;;  %s3024_s28 = smov 8  }
   0xc   :  { %31 = dma.hbm_to_vmem [thread:$0]  %s4266_s3, 2048, %s26_s25, [#allocation3], %s3023_s27, %s3023_s27, %s3024_s28  }
   0xd   :  { %3018 = dma.done.wait [#allocation3], 2048  }
   0xe   :  { %3019 = vsyncadd [#allocation3], 4294965248  ;;  %v3025_v0 = vmov 0.0   ;;  %vm3026_vm0 = vmmov 0   ;;  %v57_v1 = vld [vmem:[%s4264_s1 + $0x78] sm:$0xff]  ;;  %v56_v2 = vld [vmem:[%s4264_s1 + $0x70] sm:$0xff] }
   0xf   :  { %2342 = vmatprep.subr.mxu0 %v3025_v0  ;;  %2377 = vmatprep.subr.mxu1 %v3025_v0  ;;  %v55_v3 = vld [vmem:[%s4264_s1 + $0x68] sm:$0xff]  ;;  %v3086_v4 = vand.u32 4294901760, %v57_v1  ;;  %v3088_v5 = vand.u32 4294901760, %v56_v2  ;;  %v54_v7 = vld [vmem:[%s4264_s1 + $0x60] sm:$0xff]  ;;  %v53_v8 = vld [vmem:[%s4264_s1 + $0x58] sm:$0xff]  ;;  %s3027_s23 = smov [#allocation5]  }
  0x10   :  { %2374 = vmatprep.mubr.msk.f32.mxu0 %vm3026_vm0, %v3025_v0  ;;  %2409 = vmatprep.mubr.msk.f32.mxu1 %vm3026_vm0, %v3025_v0  ;;  %v3090_v6 = vand.u32 4294901760, %v55_v3  ;;  %v52_v9 = vld [vmem:[%s4264_s1 + $0x50] sm:$0xff]  ;;  %v3101_v10 = vand.u32 4294901760, %v54_v7  ;;  %v3103_v11 = vand.u32 4294901760, %v53_v8  ;;  %v51_v13 = vld [vmem:[%s4264_s1 + $0x48] sm:$0xff]  ;;  %v50_v14 = vld [vmem:[%s4264_s1 + $0x40] sm:$0xff] }
  0x11   :  { %v3105_v12 = vand.u32 4294901760, %v52_v9  ;;  %2343 = vmatpush3.msra.mxu0 %v3086_v4  ;;  %v3115_v15 = vsub.f32 %v57_v1, %v3086_v4  ;;  %v3118_v16 = vsub.f32 %v56_v2, %v3088_v5  ;;  %v3120_v17 = vand.u32 4294901760, %v51_v13  ;;  %v49_v19 = vld [vmem:[%s4264_s1 + $0x38] sm:$0xff]  ;;  %v48_v26 = vld [vmem:[%s4264_s1 + $0x30] sm:$0xff]  ;;  %v47_v36 = vld [vmem:[%s4264_s1 + $0x28] sm:$0xff]  ;;  %s2027_s24 = sshll.u32 %s3027_s23, 4  ;;  %s2028_s24 = int_to_ptr.vmem [resolvable:$true] %s2027_s24 }
  0x12   :  { %v3123_v18 = vsub.f32 %v55_v3, %v3090_v6  ;;  %2344 = vmatprep.subr.mxu0 %v3025_v0  ;;  %v3130_v20 = vsub.f32 %v54_v7, %v3101_v10  ;;  %v3133_v21 = vsub.f32 %v53_v8, %v3103_v11  ;;  %v3139_v25 = vand.u32 4294901760, %v50_v14  ;;  %v46_v41 = vld [vmem:[%s4264_s1 + $0x20] sm:$0xff]  ;;  %v45_v49 = vld [vmem:[%s4264_s1 + $0x18] sm:$0xff]  ;;  %v44_v54 = vld [vmem:[%s4264_s1 + $0x10] sm:$0xff]  ;;  %s2998_s25 = scalar_lea.vmem %s2028_s24, 16  ;;  %s3002_s26 = scalar_lea.vmem %s2028_s24, 32 }
  0x13   :  { %2345 = vmatpush3.msra.mxu0 %v3088_v5  ;;  %v153_v22 = vand.u32 4294901760, %v3115_v15  ;;  %v160_v23 = vand.u32 4294901760, %v3118_v16  ;;  %v3146_v28 = vand.u32 4294901760, %v49_v19  ;;  %v3150_v30 = vsub.f32 %v52_v9, %v3105_v12  ;;  %v41_v50 = vld [vmem:[%s4263_s0] sm:$0x1]  ;;  %v43_v60 = vld [vmem:[%s4264_s1 + $0x8] sm:$0xff]  ;;  %p2999_p5 = scmp.ne.s32.totalorder %s2028_s24, %s2998_s25  ;;  %p3003_p6 = scmp.lt.s32.totalorder %s2028_s24, %s2028_s24 }
  0x14   :  { %v167_v24 = vand.u32 4294901760, %v3123_v18  ;;  %2346 = vmatprep.subr.mxu0 %v3025_v0  ;;  %v174_v27 = vand.u32 4294901760, %v3130_v20  ;;  %v181_v29 = vand.u32 4294901760, %v3133_v21  ;;  %v3163_v34 = vsub.f32 %v51_v13, %v3120_v17  ;;  %v42_v7 = vld [vmem:[%s4264_s1] sm:$0xff]  ;;  %p3004_p7 = scmp.lt.s32.totalorder %s3002_s26, %s2998_s25 }
  0x15   :  { %2347 = vmatpush3.msra.mxu0 %v3090_v6  ;;  %v154_v31 = vsub.f32 %v3115_v15, %v153_v22  ;;  %v161_v32 = vsub.f32 %v3118_v16, %v160_v23  ;;  %v3166_v35 = vand.u32 4294901760, %v48_v26  ;;  %v188_v40 = vand.u32 4294901760, %v3150_v30 }
  0x16   :  { %v168_v33 = vsub.f32 %v3123_v18, %v167_v24  ;;  %2348 = vmatprep.subr.mxu0 %v3025_v0  ;;  %v175_v39 = vsub.f32 %v3130_v20, %v174_v27  ;;  %v182_v42 = vsub.f32 %v3133_v21, %v181_v29  ;;  %v3184_v43 = vsub.f32 %v50_v14, %v3139_v25  ;;  %p3005_p8 = por %p3004_p7, %p3003_p6 }
  0x17   :  { %2349 = vmatpush3.msra.mxu0 %v3101_v10  ;;  %v155_v37 = vand.u32 4294901760, %v154_v31  ;;  %v162_v38 = vand.u32 4294901760, %v161_v32  ;;  %v3187_v45 = vand.u32 4294901760, %v47_v36  ;;  %v195_v46 = vand.u32 4294901760, %v3163_v34 }
  0x18   :  { %2350 = vmatprep.subr.mxu0 %v3025_v0  ;;  %v169_v44 = vand.u32 4294901760, %v168_v33  ;;  %v3191_v47 = vsub.f32 %v49_v19, %v3146_v28  ;;  %v3195_v48 = vand.u32 4294901760, %v46_v41  ;;  %v176_v51 = vand.u32 4294901760, %v175_v39  ;;  %p3006_p9 = pnand %p3005_p8, %p2999_p5 }
  0x19   :  { %2351 = vmatpush3.msra.mxu0 %v3103_v11  ;;  %2378 = vmatpush3.msra.mxu1 %v155_v37  ;;  %v189_v52 = vsub.f32 %v3150_v30, %v188_v40  ;;  %v202_v53 = vand.u32 4294901760, %v3184_v43  ;;  %v3212_v55 = vsub.f32 %v48_v26, %v3166_v35  ;;  %v183_v56 = vand.u32 4294901760, %v182_v42 }
  0x1a   :  { %2352 = vmatprep.subr.mxu0 %v3025_v0  ;;  %2379 = vmatprep.subr.mxu1 %v3025_v0  ;;  %v209_v57 = vand.u32 4294901760, %v3191_v47  ;;  %v196_v58 = vsub.f32 %v3163_v34, %v195_v46  ;;  %v3221_v59 = vand.u32 4294901760, %v45_v49  ;;  %v3227_v61 = vsub.f32 %v47_v36, %v3187_v45 }
  0x1b   :  { %2353 = vmatpush3.msra.mxu0 %v3105_v12  ;;  %2380 = vmatpush3.msra.mxu1 %v162_v38  ;;  %v3229_v62 = vand.u32 4294901760, %v41_v50  ;;  %v3233_v63 = vand.u32 4294901760, %v44_v54  ;;  %v190_v1 = vand.u32 4294901760, %v189_v52  ;;  %v203_v2 = vsub.f32 %v3184_v43, %v202_v53 }
  0x1c   :  { %2354 = vmatprep.subr.mxu0 %v3025_v0  ;;  %2381 = vmatprep.subr.mxu1 %v3025_v0  ;;  %v216_v3 = vand.u32 4294901760, %v3212_v55  ;;  %v3244_v8 = vsub.f32 %v46_v41, %v3195_v48  ;;  %v210_v9 = vsub.f32 %v3191_v47, %v209_v57  ;;  %v3251_v13 = vand.u32 4294901760, %v43_v60 }
  0x1d   :  { %2355 = vmatpush3.msra.mxu0 %v3120_v17  ;;  %2382 = vmatpush3.msra.mxu1 %v169_v44  ;;  %v197_v14 = vand.u32 4294901760, %v196_v58  ;;  %v223_v19 = vand.u32 4294901760, %v3227_v61  ;;  %v3256_v26 = vsub.f32 %v41_v50, %v3229_v62  ;;  %v3259_v31 = vsub.f32 %v45_v49, %v3221_v59 }
  0x1e   :  { %2356 = vmatprep.subr.mxu0 %v3025_v0  ;;  %2383 = vmatprep.subr.mxu1 %v3025_v0  ;;  %v3263_v32 = vand.u32 4294901760, %v42_v7  ;;  %v204_v33 = vand.u32 4294901760, %v203_v2  ;;  %v217_v36 = vsub.f32 %v3212_v55, %v216_v3  ;;  %v230_v37 = vand.u32 4294901760, %v3244_v8 }
  0x1f   :  { %2357 = vmatpush3.msra.mxu0 %v3139_v25  ;;  %2384 = vmatpush3.msra.mxu1 %v176_v51  ;;  %v3271_v38 = vsub.f32 %v44_v54, %v3233_v63  ;;  %v211_v39 = vand.u32 4294901760, %v210_v9  ;;  %v224_v41 = vsub.f32 %v3227_v61, %v223_v19  ;;  %v142_v42 = vand.u32 4294901760, %v3256_v26 }
  0x20   :  { %2358 = vmatprep.subr.mxu0 %v3025_v0  ;;  %2385 = vmatprep.subr.mxu1 %v3025_v0  ;;  %v237_v44 = vand.u32 4294901760, %v3259_v31  ;;  %v3282_v49 = vsub.f32 %v43_v60, %v3251_v13  ;;  %v218_v50 = vand.u32 4294901760, %v217_v36  ;;  %v231_v51 = vsub.f32 %v3244_v8, %v230_v37 }
  0x21   :  { %2359 = vmatpush3.msra.mxu0 %v3146_v28  ;;  %2386 = vmatpush3.msra.mxu1 %v183_v56  ;;  %v244_v52 = vand.u32 4294901760, %v3271_v38  ;;  %v3292_v54 = vsub.f32 %v42_v7, %v3263_v32  ;;  %v225_v56 = vand.u32 4294901760, %v224_v41  ;;  %v143_v58 = vsub.f32 %v3256_v26, %v142_v42 }
  0x22   :  { %2360 = vmatprep.subr.mxu0 %v3025_v0  ;;  %2387 = vmatprep.subr.mxu1 %v3025_v0  ;;  %v238_v60 = vsub.f32 %v3259_v31, %v237_v44  ;;  %v232_v2 = vand.u32 4294901760, %v231_v51  ;;  %vm2019_vm1 = vcmask 122880  }
  0x23   :  { %2361 = vmatpush3.msra.mxu0 %v3166_v35  ;;  %2388 = vmatpush3.msra.mxu1 %v190_v1  ;;  %v251_v1 = vand.u32 4294901760, %v3282_v49  ;;  %v245_v7 = vsub.f32 %v3271_v38, %v244_v52  ;;  %v258_v9 = vand.u32 4294901760, %v3292_v54 }
  0x24   :  { %2362 = vmatprep.subr.mxu0 %v3025_v0  ;;  %2389 = vmatprep.subr.mxu1 %v3025_v0 }
  0x25   :  { %2363 = vmatpush3.msra.mxu0 %v3187_v45  ;;  %2390 = vmatpush3.msra.mxu1 %v197_v14  ;;  %v144_v14 = vand.u32 4294901760, %v143_v58  ;;  %v252_v36 = vsub.f32 %v3282_v49, %v251_v1  ;;  %v259_v41 = vsub.f32 %v3292_v54, %v258_v9  ;;  %v707_v58 = vld [vmem:[#allocation2 + $0x30] sm:$0xff] }
  0x26   :  { %2364 = vmatprep.subr.mxu0 %v3025_v0  ;;  %2391 = vmatprep.subr.mxu1 %v3025_v0 }
  0x27   :  { %2365 = vmatpush3.msra.mxu0 %v3195_v48  ;;  %2392 = vmatpush3.msra.mxu1 %v204_v33  ;;  %v239_v33 = vand.u32 4294901760, %v238_v60  ;;  %v260_v51 = vand.u32 4294901760, %v259_v41 }
  0x28   :  { %2366 = vmatprep.subr.mxu0 %v3025_v0  ;;  %2393 = vmatprep.subr.mxu1 %v3025_v0 }
  0x29   :  { %2367 = vmatpush3.msra.mxu0 %v3221_v59  ;;  %2394 = vmatpush3.msra.mxu1 %v211_v39  ;;  %v246_v39 = vand.u32 4294901760, %v245_v7  ;;  %v706_v7 = vld [vmem:[#allocation2 + $0x28] sm:$0xff] }
  0x2a   :  { %2368 = vmatprep.subr.mxu0 %v3025_v0  ;;  %2395 = vmatprep.subr.mxu1 %v3025_v0 }
  0x2b   :  { %2369 = vmatpush3.msra.mxu0 %v3233_v63  ;;  %2396 = vmatpush3.msra.mxu1 %v218_v50  ;;  %v253_v50 = vand.u32 4294901760, %v252_v36  ;;  %v705_v36 = vld [vmem:[#allocation2 + $0x20] sm:$0xff] }
  0x2c   :  { %2370 = vmatprep.subr.mxu0 %v3025_v0  ;;  %2397 = vmatprep.subr.mxu1 %v3025_v0 }
  0x2d   :  { %2371 = vmatpush3.msra.mxu0 %v3251_v13  ;;  %2398 = vmatpush3.msra.mxu1 %v225_v56 }
  0x2e   :  { %2372 = vmatprep.subr.mxu0 %v3025_v0  ;;  %2399 = vmatprep.subr.mxu1 %v3025_v0 }
  0x2f   :  { %2373 = vmatpush3.msra.mxu0 %v3263_v32  ;;  %2400 = vmatpush3.msra.mxu1 %v232_v2  ;;  %v3591_v2 = vand.u32 4294901760, %v707_v58 }
  0x30   :  { %2401 = vmatprep.subr.mxu1 %v3025_v0  ;;  %2412 = vmatprep.subr.mxu0 %v3025_v0 }
  0x31   :  { %2375 = vmatmul.mubr.f32.vlgmr.msra.gmra.mxu0 %v144_v14  ;;  %2402 = vmatpush3.msra.mxu1 %v239_v33  ;;  %v3597_v14 = vsub.f32 %v707_v58, %v3591_v2  ;;  %v3599_v33 = vand.u32 4294901760, %v706_v7 }
  0x32   :  { %2413 = vmatpush3.msra.mxu0 %v3115_v15  ;;  %2403 = vmatprep.subr.mxu1 %v3025_v0  ;;  %v713_v15 = vld [vmem:[#allocation2 + $0x60] sm:$0xff] }
  0x33   :  { %2414 = vmatprep.subr.mxu0 %v3025_v0  ;;  %2404 = vmatpush3.msra.mxu1 %v246_v39  ;;  %v875_v41 = vand.u32 4294901760, %v3597_v14 }
  0x34   :  { %2415 = vmatpush3.msra.mxu0 %v3118_v16  ;;  %2405 = vmatprep.subr.mxu1 %v3025_v0  ;;  %v712_v16 = vld [vmem:[#allocation2 + $0x58] sm:$0xff] }
  0x35   :  { %2416 = vmatprep.subr.mxu0 %v3025_v0  ;;  %2406 = vmatpush3.msra.mxu1 %v253_v50  ;;  %v3606_v50 = vsub.f32 %v706_v7, %v3599_v33 }
  0x36   :  { %2417 = vmatpush3.msra.mxu0 %v3123_v18  ;;  %2407 = vmatprep.subr.mxu1 %v3025_v0 }
  0x37   :  { %2418 = vmatprep.subr.mxu0 %v3025_v0  ;;  %2408 = vmatpush3.msra.mxu1 %v260_v51  ;;  %v3608_v51 = vand.u32 4294901760, %v705_v36 }
  0x38   :  { %2419 = vmatpush3.msra.mxu0 %v3130_v20  ;;  %2410 = vmatmul.mubr.f32.vlgmr.msra.gmra.mxu1 %v3229_v62 }
  0x39   :  { %2420 = vmatprep.subr.mxu0 %v3025_v0  ;;  %2447 = vmatprep.subr.mxu1 %v3025_v0 }
  0x3a   :  { %2421 = vmatpush3.msra.mxu0 %v3133_v21  ;;  %2448 = vmatpush3.msra.mxu1 %v3086_v4  ;;  %v3506_v21 = vand.u32 4294901760, %v713_v15 }
  0x3b   :  { %2422 = vmatprep.subr.mxu0 %v3025_v0  ;;  %2449 = vmatprep.subr.mxu1 %v3025_v0 }
  0x3c   :  { %2423 = vmatpush3.msra.mxu0 %v3150_v30  ;;  %2450 = vmatpush3.msra.mxu1 %v3088_v5 }
  0x3d   :  { %2424 = vmatprep.subr.mxu0 %v3025_v0  ;;  %2451 = vmatprep.subr.mxu1 %v3025_v0 }
  0x3e   :  { %2425 = vmatpush3.msra.mxu0 %v3163_v34  ;;  %2452 = vmatpush3.msra.mxu1 %v3090_v6 }
  0x3f   :  { %2426 = vmatprep.subr.mxu0 %v3025_v0  ;;  %2453 = vmatprep.subr.mxu1 %v3025_v0 }
  0x40   :  { %2427 = vmatpush3.msra.mxu0 %v3184_v43  ;;  %2454 = vmatpush3.msra.mxu1 %v3101_v10 }
  0x41   :  { %2428 = vmatprep.subr.mxu0 %v3025_v0  ;;  %2455 = vmatprep.subr.mxu1 %v3025_v0 }
  0x42   :  { %2429 = vmatpush3.msra.mxu0 %v3191_v47  ;;  %2456 = vmatpush3.msra.mxu1 %v3103_v11 }
  0x43   :  { %2430 = vmatprep.subr.mxu0 %v3025_v0  ;;  %2457 = vmatprep.subr.mxu1 %v3025_v0 }
  0x44   :  { %2431 = vmatpush3.msra.mxu0 %v3212_v55  ;;  %2458 = vmatpush3.msra.mxu1 %v3105_v12 }
  0x45   :  { %2432 = vmatprep.subr.mxu0 %v3025_v0  ;;  %2459 = vmatprep.subr.mxu1 %v3025_v0 }
  0x46   :  { %2433 = vmatpush3.msra.mxu0 %v3227_v61  ;;  %2460 = vmatpush3.msra.mxu1 %v3120_v17 }
  0x47   :  { %2434 = vmatprep.subr.mxu0 %v3025_v0  ;;  %2461 = vmatprep.subr.mxu1 %v3025_v0 }
  0x48   :  { %2435 = vmatpush3.msra.mxu0 %v3244_v8  ;;  %2462 = vmatpush3.msra.mxu1 %v3139_v25 }
  0x49   :  { %2436 = vmatprep.subr.mxu0 %v3025_v0  ;;  %2463 = vmatprep.subr.mxu1 %v3025_v0 }
  0x4a   :  { %2437 = vmatpush3.msra.mxu0 %v3259_v31  ;;  %2464 = vmatpush3.msra.mxu1 %v3146_v28 }
  0x4b   :  { %2438 = vmatprep.subr.mxu0 %v3025_v0  ;;  %2465 = vmatprep.subr.mxu1 %v3025_v0 }
  0x4c   :  { %2439 = vmatpush3.msra.mxu0 %v3271_v38  ;;  %2466 = vmatpush3.msra.mxu1 %v3166_v35 }
  0x4d   :  { %2440 = vmatprep.subr.mxu0 %v3025_v0  ;;  %2467 = vmatprep.subr.mxu1 %v3025_v0 }
  0x4e   :  { %2441 = vmatpush3.msra.mxu0 %v3282_v49  ;;  %2468 = vmatpush3.msra.mxu1 %v3187_v45 }
  0x4f   :  { %2442 = vmatprep.subr.mxu0 %v3025_v0  ;;  %2469 = vmatprep.subr.mxu1 %v3025_v0 }
  0x50   :  { %2443 = vmatpush3.msra.mxu0 %v3292_v54  ;;  %2444 = vmatprep.mubr.msk.f32.mxu0 %vm3026_vm0, %v3025_v0 }
  0x51   :  { %2470 = vmatpush3.msra.mxu1 %v3195_v48  ;;  %2445 = vmatmul.mubr.f32.vlgmr.msra.gmra.mxu0 %v3256_v26 }
  0x52   :  { %2471 = vmatprep.subr.mxu1 %v3025_v0  ;;  %2482 = vmatprep.subr.mxu0 %v3025_v0 }
  0x53   :  { %2472 = vmatpush3.msra.mxu1 %v3221_v59  ;;  %2483 = vmatpush3.msra.mxu0 %v153_v22  ;;  %v711_v22 = vld [vmem:[#allocation2 + $0x50] sm:$0xff] }
  0x54   :  { %2473 = vmatprep.subr.mxu1 %v3025_v0  ;;  %2484 = vmatprep.subr.mxu0 %v3025_v0 }
  0x55   :  { %2474 = vmatpush3.msra.mxu1 %v3233_v63  ;;  %2485 = vmatpush3.msra.mxu0 %v160_v23  ;;  %v710_v23 = vld [vmem:[#allocation2 + $0x48] sm:$0xff] }
  0x56   :  { %2475 = vmatprep.subr.mxu1 %v3025_v0  ;;  %2486 = vmatprep.subr.mxu0 %v3025_v0 }
  0x57   :  { %2476 = vmatpush3.msra.mxu1 %v3251_v13  ;;  %2487 = vmatpush3.msra.mxu0 %v167_v24  ;;  %v709_v24 = vld [vmem:[#allocation2 + $0x40] sm:$0xff] }
  0x58   :  { %2477 = vmatprep.subr.mxu1 %v3025_v0  ;;  %2488 = vmatprep.subr.mxu0 %v3025_v0 }
  0x59   :  { %2478 = vmatpush3.msra.mxu1 %v3263_v32  ;;  %2479 = vmatprep.mubr.msk.f32.mxu1 %vm3026_vm0, %v3025_v0 }
  0x5a   :  { %2489 = vmatpush3.msra.mxu0 %v174_v27  ;;  %2480 = vmatmul.mubr.f32.vlgmr.msra.gmra.mxu1 %v142_v42  ;;  %v3511_v27 = vand.u32 4294901760, %v711_v22 }
  0x5b   :  { %2490 = vmatprep.subr.mxu0 %v3025_v0  ;;  %2517 = vmatprep.subr.mxu1 %v3025_v0 }
  0x5c   :  { %2491 = vmatpush3.msra.mxu0 %v181_v29  ;;  %2518 = vmatpush3.msra.mxu1 %v3086_v4  ;;  %v716_v4 = vld [vmem:[#allocation2 + $0x78] sm:$0xff]  ;;  %v3516_v29 = vand.u32 4294901760, %v709_v24 }
  0x5d   :  { %2492 = vmatprep.subr.mxu0 %v3025_v0  ;;  %2519 = vmatprep.subr.mxu1 %v3025_v0 }
  0x5e   :  { %2493 = vmatpush3.msra.mxu0 %v188_v40  ;;  %2520 = vmatpush3.msra.mxu1 %v3088_v5  ;;  %v3491_v5 = vand.u32 4294901760, %v716_v4  ;;  %v3526_v40 = vsub.f32 %v713_v15, %v3506_v21  ;;  %v3540_v47 = vsub.f32 %v709_v24, %v3516_v29  ;;  %v3618_v15 = vsub.f32 %v705_v36, %v3608_v51 }
  0x5f   :  { %2494 = vmatprep.subr.mxu0 %v3025_v0  ;;  %2521 = vmatprep.subr.mxu1 %v3025_v0 }
  0x60   :  { %2495 = vmatpush3.msra.mxu0 %v195_v46  ;;  %2522 = vmatpush3.msra.mxu1 %v3090_v6  ;;  %v715_v6 = vld [vmem:[#allocation2 + $0x70] sm:$0xff]  ;;  %v861_v31 = vand.u32 4294901760, %v3540_v47 }
  0x61   :  { %2496 = vmatprep.subr.mxu0 %v3025_v0  ;;  %2523 = vmatprep.subr.mxu1 %v3025_v0 }
  0x62   :  { %2497 = vmatpush3.msra.mxu0 %v202_v53  ;;  %2524 = vmatpush3.msra.mxu1 %v3101_v10  ;;  %v3494_v10 = vsub.f32 %v716_v4, %v3491_v5  ;;  %v862_v56 = vsub.f32 %v3540_v47, %v861_v31  ;;  %v704_v4 = vld [vmem:[#allocation2 + $0x18] sm:$0xff] }
  0x63   :  { %2498 = vmatprep.subr.mxu0 %v3025_v0  ;;  %2525 = vmatprep.subr.mxu1 %v3025_v0 }
  0x64   :  { %2499 = vmatpush3.msra.mxu0 %v209_v57  ;;  %2526 = vmatpush3.msra.mxu1 %v3103_v11  ;;  %v3496_v11 = vand.u32 4294901760, %v715_v6 }
  0x65   :  { %2500 = vmatprep.subr.mxu0 %v3025_v0  ;;  %2527 = vmatprep.subr.mxu1 %v3025_v0 }
  0x66   :  { %2501 = vmatpush3.msra.mxu0 %v216_v3  ;;  %2528 = vmatpush3.msra.mxu1 %v3105_v12  ;;  %v714_v12 = vld [vmem:[#allocation2 + $0x68] sm:$0xff]  ;;  %v3502_v18 = vsub.f32 %v715_v6, %v3496_v11  ;;  %v876_v6 = vsub.f32 %v3597_v14, %v875_v41 }
  0x67   :  { %2502 = vmatprep.subr.mxu0 %v3025_v0  ;;  %2529 = vmatprep.subr.mxu1 %v3025_v0  ;;  %v3504_v20 = vand.u32 4294901760, %v714_v12 }
  0x68   :  { %2503 = vmatpush3.msra.mxu0 %v223_v19  ;;  %2530 = vmatpush3.msra.mxu1 %v3120_v17  ;;  %v812_v17 = vand.u32 4294901760, %v3494_v10  ;;  %v819_v34 = vand.u32 4294901760, %v3502_v18 }
  0x69   :  { %2504 = vmatprep.subr.mxu0 %v3025_v0  ;;  %2531 = vmatprep.subr.mxu1 %v3025_v0 }
  0x6a   :  { %2505 = vmatpush3.msra.mxu0 %v230_v37  ;;  %2532 = vmatpush3.msra.mxu1 %v3139_v25  ;;  %v3509_v25 = vand.u32 4294901760, %v712_v16  ;;  %v813_v30 = vsub.f32 %v3494_v10, %v812_v17  ;;  %v820_v55 = vsub.f32 %v3502_v18, %v819_v34 }
  0x6b   :  { %2506 = vmatprep.subr.mxu0 %v3025_v0  ;;  %2533 = vmatprep.subr.mxu1 %v3025_v0 }
  0x6c   :  { %2507 = vmatpush3.msra.mxu0 %v237_v44  ;;  %2534 = vmatpush3.msra.mxu1 %v3146_v28  ;;  %v3514_v28 = vand.u32 4294901760, %v710_v23  ;;  %v3530_v43 = vsub.f32 %v712_v16, %v3509_v25  ;;  %v814_v53 = vand.u32 4294901760, %v813_v30  ;;  %v821_v3 = vand.u32 4294901760, %v820_v55  ;;  %v702_v55 = vld [vmem:[#allocation2 + $0x8] sm:$0xff] }
  0x6d   :  { %2508 = vmatprep.subr.mxu0 %v3025_v0  ;;  %2535 = vmatprep.subr.mxu1 %v3025_v0  ;;  %v3620_v16 = vand.u32 4294901760, %v704_v4  ;;  %v889_v30 = vand.u32 4294901760, %v3618_v15 }
  0x6e   :  { %2509 = vmatpush3.msra.mxu0 %v244_v52  ;;  %2536 = vmatpush3.msra.mxu1 %v3166_v35  ;;  %v3523_v35 = vsub.f32 %v714_v12, %v3504_v20  ;;  %v3536_v46 = vsub.f32 %v710_v23, %v3514_v28  ;;  %v840_v61 = vand.u32 4294901760, %v3530_v43  ;;  %v882_v12 = vand.u32 4294901760, %v3606_v50 }
  0x6f   :  { %2510 = vmatprep.subr.mxu0 %v3025_v0  ;;  %2537 = vmatprep.subr.mxu1 %v3025_v0  ;;  %v877_v23 = vand.u32 4294901760, %v876_v6 }
  0x70   :  { %2511 = vmatpush3.msra.mxu0 %v251_v1  ;;  %2538 = vmatpush3.msra.mxu1 %v3187_v45  ;;  %v3533_v45 = vsub.f32 %v711_v22, %v3511_v27  ;;  %v826_v57 = vand.u32 4294901760, %v3523_v35  ;;  %v841_v26 = vsub.f32 %v3530_v43, %v840_v61  ;;  %v703_v22 = vld [vmem:[#allocation2 + $0x10] sm:$0xff]  ;;  %v883_v24 = vsub.f32 %v3606_v50, %v882_v12 }
  0x71   :  { %2512 = vmatprep.subr.mxu0 %v3025_v0  ;;  %2539 = vmatprep.subr.mxu1 %v3025_v0 }
  0x72   :  { %2513 = vmatpush3.msra.mxu0 %v258_v9  ;;  %2514 = vmatprep.mubr.msk.f32.mxu0 %vm3026_vm0, %v3025_v0  ;;  %v827_v8 = vsub.f32 %v3523_v35, %v826_v57  ;;  %v842_v44 = vand.u32 4294901760, %v841_v26  ;;  %v863_v9 = vand.u32 4294901760, %v862_v56  ;;  %v3641_v26 = vand.u32 4294901760, %v702_v55 }
  0x73   :  { %2540 = vmatpush3.msra.mxu1 %v3195_v48  ;;  %2515 = vmatmul.mubr.f32.vlgmr.msra.gmra.mxu0 %v3229_v62  ;;  %v708_v48 = vld [vmem:[#allocation2 + $0x38] sm:$0xff] }
  0x74   :  { %2541 = vmatprep.subr.mxu1 %v3025_v0  ;;  %2549 = vmatprep.mubr.msk.f32.mxu1 %vm3026_vm0, %v3025_v0  ;;  %v3559_v19 = vand.u32 4294901760, %v708_v48 }
  0x75   :  { %2542 = vmatpush3.msra.mxu1 %v3221_v59  ;;  %2552 = vmatprep.subr.mxu0 %v3025_v0  ;;  %v833_v59 = vand.u32 4294901760, %v3526_v40 }
  0x76   :  { %2543 = vmatprep.subr.mxu1 %v3025_v0  ;;  %2584 = vmatprep.mubr.msk.f32.mxu0 %vm3026_vm0, %v3025_v0  ;;  %v3570_v42 = vsub.f32 %v708_v48, %v3559_v19  ;;  %v3630_v48 = vsub.f32 %v704_v4, %v3620_v16 }
  0x77   :  { %2544 = vmatpush3.msra.mxu1 %v3233_v63  ;;  %2553 = vmatpush3.msra.mxu0 %v3491_v5  ;;  %v854_v63 = vand.u32 4294901760, %v3536_v46 }
  0x78   :  { %2545 = vmatprep.subr.mxu1 %v3025_v0  ;;  %2554 = vmatprep.subr.mxu0 %v3025_v0  ;;  %v868_v52 = vand.u32 4294901760, %v3570_v42 }
  0x79   :  { %2546 = vmatpush3.msra.mxu1 %v3251_v13  ;;  %2555 = vmatpush3.msra.mxu0 %v3496_v11  ;;  %v834_v13 = vsub.f32 %v3526_v40, %v833_v59  ;;  %v855_v49 = vsub.f32 %v3536_v46, %v854_v63 }
  0x7a   :  { %2547 = vmatprep.subr.mxu1 %v3025_v0  ;;  %2556 = vmatprep.subr.mxu0 %v3025_v0  ;;  %v869_v1 = vsub.f32 %v3570_v42, %v868_v52 }
  0x7b   :  { %2548 = vmatpush3.msra.mxu1 %v3263_v32  ;;  %2557 = vmatpush3.msra.mxu0 %v3504_v20  ;;  %v828_v32 = vand.u32 4294901760, %v827_v8  ;;  %v835_v37 = vand.u32 4294901760, %v834_v13  ;;  %v856_v60 = vand.u32 4294901760, %v855_v49  ;;  %v890_v8 = vsub.f32 %v3618_v15, %v889_v30 }
  0x7c   :  { %2550 = vmatmul.mubr.f32.vlgmr.msra.gmra.mxu1 %v3229_v62  ;;  %2587 = vmatprep.subr.mxu1 %v3025_v0  ;;  %v847_v62 = vand.u32 4294901760, %v3533_v45  ;;  %v870_v39 = vand.u32 4294901760, %v869_v1  ;;  %v4274_v13 = vand.u32 4294901760, %v3630_v48  ;;  %v3653_v49 = vsub.f32 %v702_v55, %v3641_v26 }
  0x7d   :  { %2619 = vmatprep.mubr.msk.f32.mxu1 %vm3026_vm0, %v3025_v0  ;;  %2558 = vmatprep.subr.mxu0 %v3025_v0 }
  0x7e   :  { %2559 = vmatpush3.msra.mxu0 %v3506_v21  ;;  %2588 = vmatpush3.msra.mxu1 %v814_v53  ;;  %v848_v38 = vsub.f32 %v3533_v45, %v847_v62  ;;  %v3634_v53 = vand.u32 4294901760, %v703_v22 }
  0x7f   :  { %2560 = vmatprep.subr.mxu0 %v3025_v0  ;;  %2589 = vmatprep.subr.mxu1 %v3025_v0 }
  0x80   :  { %2561 = vmatpush3.msra.mxu0 %v3509_v25  ;;  %2590 = vmatpush3.msra.mxu1 %v821_v3  ;;  %v849_v54 = vand.u32 4294901760, %v848_v38  ;;  %v884_v3 = vand.u32 4294901760, %v883_v24  ;;  %v891_v38 = vand.u32 4294901760, %v890_v8 }
  0x81   :  { %2562 = vmatprep.subr.mxu0 %v3025_v0  ;;  %2591 = vmatprep.subr.mxu1 %v3025_v0 }
  0x82   :  { %2563 = vmatpush3.msra.mxu0 %v3511_v27  ;;  %2592 = vmatpush3.msra.mxu1 %v828_v32  ;;  %v3646_v32 = vsub.f32 %v703_v22, %v3634_v53 }
  0x83   :  { %2564 = vmatprep.subr.mxu0 %v3025_v0  ;;  %2593 = vmatprep.subr.mxu1 %v3025_v0 }
  0x84   :  { %2565 = vmatpush3.msra.mxu0 %v3514_v28  ;;  %2594 = vmatpush3.msra.mxu1 %v835_v37  ;;  %v701_v37 = vld [vmem:[#allocation2] sm:$0xff]  ;;  %v4273_v56 = vand.u32 4294901760, %v3646_v32 }
  0x85   :  { %2566 = vmatprep.subr.mxu0 %v3025_v0  ;;  %2595 = vmatprep.subr.mxu1 %v3025_v0 }
  0x86   :  { %2567 = vmatpush3.msra.mxu0 %v3516_v29  ;;  %2596 = vmatpush3.msra.mxu1 %v842_v44  ;;  %v897_v44 = vsub.f32 %v3630_v48, %v4274_v13  ;;  %v904_v7 = vsub.f32 %v3646_v32, %v4273_v56 }
  0x87   :  { %2568 = vmatprep.subr.mxu0 %v3025_v0  ;;  %2597 = vmatprep.subr.mxu1 %v3025_v0 }
  0x88   :  { %2569 = vmatpush3.msra.mxu0 %v3559_v19  ;;  %2598 = vmatpush3.msra.mxu1 %v849_v54  ;;  %v3655_v54 = vand.u32 4294901760, %v701_v37  ;;  %v898_v58 = vand.u32 4294901760, %v897_v44 }
  0x89   :  { %2570 = vmatprep.subr.mxu0 %v3025_v0  ;;  %2599 = vmatprep.subr.mxu1 %v3025_v0 }
  0x8a   :  { %2571 = vmatpush3.msra.mxu0 %v3591_v2  ;;  %2600 = vmatpush3.msra.mxu1 %v856_v60  ;;  %v4272_v60 = vand.u32 4294901760, %v3653_v49  ;;  %v3663_v1 = vsub.f32 %v701_v37, %v3655_v54 }
  0x8b   :  { %2572 = vmatprep.subr.mxu0 %v3025_v0  ;;  %2601 = vmatprep.subr.mxu1 %v3025_v0 }
  0x8c   :  { %2573 = vmatpush3.msra.mxu0 %v3599_v33  ;;  %2602 = vmatpush3.msra.mxu1 %v863_v9  ;;  %v911_v9 = vsub.f32 %v3653_v49, %v4272_v60  ;;  %v4271_v36 = vand.u32 4294901760, %v3663_v1 }
  0x8d   :  { %2574 = vmatprep.subr.mxu0 %v3025_v0  ;;  %2603 = vmatprep.subr.mxu1 %v3025_v0 }
  0x8e   :  { %2575 = vmatpush3.msra.mxu0 %v3608_v51  ;;  %2604 = vmatpush3.msra.mxu1 %v870_v39  ;;  %v905_v39 = vand.u32 4294901760, %v904_v7  ;;  %v912_v4 = vand.u32 4294901760, %v911_v9  ;;  %v918_v6 = vsub.f32 %v3663_v1, %v4271_v36 }
  0x8f   :  { %2576 = vmatprep.subr.mxu0 %v3025_v0  ;;  %2605 = vmatprep.subr.mxu1 %v3025_v0 }
  0x90   :  { %2577 = vmatpush3.msra.mxu0 %v3620_v16  ;;  %2606 = vmatpush3.msra.mxu1 %v877_v23  ;;  %v919_v22 = vand.u32 4294901760, %v918_v6 }
  0x91   :  { %2578 = vmatprep.subr.mxu0 %v3025_v0  ;;  %2607 = vmatprep.subr.mxu1 %v3025_v0 }
  0x92   :  { %2579 = vmatpush3.msra.mxu0 %v3634_v53  ;;  %2608 = vmatpush3.msra.mxu1 %v884_v3 }
  0x93   :  { %2580 = vmatprep.subr.mxu0 %v3025_v0  ;;  %2609 = vmatprep.subr.mxu1 %v3025_v0 }
  0x94   :  { %2581 = vmatpush3.msra.mxu0 %v3641_v26  ;;  %2610 = vmatpush3.msra.mxu1 %v891_v38 }
  0x95   :  { %2582 = vmatprep.subr.mxu0 %v3025_v0  ;;  %2611 = vmatprep.subr.mxu1 %v3025_v0 }
  0x96   :  { %2583 = vmatpush3.msra.mxu0 %v3655_v54  ;;  %2612 = vmatpush3.msra.mxu1 %v898_v58  ;;  %v58_v58 = vld [vmem:[%s4265_s2] sm:$0x1] }
  0x97   :  { %2622 = vmatprep.subr.mxu0 %v3025_v0  ;;  %2613 = vmatprep.subr.mxu1 %v3025_v0 }
  0x98   :  { %2614 = vmatpush3.msra.mxu1 %v905_v39 }
  0x99   :  { %2615 = vmatprep.subr.mxu1 %v3025_v0 }
  0x9a   :  { %2616 = vmatpush3.msra.mxu1 %v912_v4 }
  0x9b   :  { %2617 = vmatprep.subr.mxu1 %v3025_v0 }
  0x9c   :  { %2618 = vmatpush3.msra.mxu1 %v919_v22 }
  0x9d   :  { %2657 = vmatprep.subr.mxu1 %v3025_v0 }
  0xf1   :  { %v146_v23 = vpop.f32.mrf.mxu0 }
  0xf2   :  { %v147_v7 = vadd.f32 %v146_v23, %v58_v58 }
  0xf3   :  { %v2376_v24 = vpop.f32.mrf.mxu0 }
  0xf8   :  { %v297_v55 = vpop.f32.mrf.mxu1 }
  0xf9   :  { %v298_v39 = vadd.f32 %v297_v55, %v147_v7 }
  0xfa   :  { %v2411_v3 = vpop.f32.mrf.mxu1 }
 0x111   :  { %v401_v8 = vpop.f32.mrf.mxu0 }
 0x112   :  { %v402_v6 = vadd.f32 %v401_v8, %v298_v39 }
 0x113   :  { %v2446_v37 = vpop.f32.mrf.mxu0 }
 0x11a   :  { %v490_v38 = vpop.f32.mrf.mxu1 }
 0x11b   :  { %v491_v22 = vadd.f32 %v490_v38, %v402_v6  ;;  %v1367_v38 = vld [vmem:[%s4268_s5 + $0x38] sm:$0xff] }
 0x11c   :  { %v2481_v44 = vpop.f32.mrf.mxu1  ;;  %v3969_v7 = vand.u32 4294901760, %v1367_v38 }
 0x133   :  { %v609_v9 = vpop.f32.mrf.mxu0 }
 0x134   :  { %v610_v36 = vadd.f32 %v609_v9, %v491_v22  ;;  %v1366_v9 = vld [vmem:[%s4268_s5 + $0x30] sm:$0xff]  ;;  %v1365_v22 = vld [vmem:[%s4268_s5 + $0x28] sm:$0xff] }
 0x135   :  { %v2516_v4 = vpop.f32.mrf.mxu0  ;;  %v3980_v6 = vand.u32 4294901760, %v1366_v9 }
 0x136   :  { %v3978_v4 = vsub.f32 %v1367_v38, %v3969_v7 }
 0x13c   :  { %v696_v60 = vpop.f32.mrf.mxu1 }
 0x13d   :  { %v697_v56 = vadd.f32 %v696_v60, %v610_v36 }
 0x13e   :  { %v2551_v24 = vpop.f32.mrf.mxu1 }
 0x13f   :  { %v700_v13 = vmax.f32 %v697_v56, 0.0 }
 0x141   :  { %v3686_v3 = vand.u32 4294901760, %v700_v13 }
 0x143   :  { %v3689_v37 = vsub.f32 %v700_v13, %v3686_v3  ;;  %2620 = vmatmul.mubr.f32.vlgmr.msra.gmra.mxu1 %v3686_v3 }
 0x144   :  { %2658 = vmatpush3.msra.mxu1 %v3491_v5  ;;  %2689 = vmatprep.mubr.msk.f32.mxu1 %vm3026_vm0, %v3025_v0 }
 0x145   :  { %v801_v23 = vand.u32 4294901760, %v3689_v37  ;;  %2659 = vmatprep.subr.mxu1 %v3025_v0 }
 0x146   :  { %2660 = vmatpush3.msra.mxu1 %v3496_v11 }
 0x147   :  { %v802_v56 = vsub.f32 %v3689_v37, %v801_v23  ;;  %2661 = vmatprep.subr.mxu1 %v3025_v0 }
 0x148   :  { %2662 = vmatpush3.msra.mxu1 %v3504_v20 }
 0x149   :  { %2663 = vmatprep.subr.mxu1 %v3025_v0  ;;  %v803_v13 = vand.u32 4294901760, %v802_v56  ;;  %v1364_v56 = vld [vmem:[%s4268_s5 + $0x20] sm:$0xff] }
 0x14a   :  { %2664 = vmatpush3.msra.mxu1 %v3506_v21 }
 0x14b   :  { %2665 = vmatprep.subr.mxu1 %v3025_v0  ;;  %2585 = vmatmul.mubr.f32.vlgmr.msra.gmra.mxu0 %v803_v13 }
 0x14c   :  { %2623 = vmatpush3.msra.mxu0 %v3494_v10  ;;  %2666 = vmatpush3.msra.mxu1 %v3509_v25  ;;  %v4280_v10 = vand.u32 4294901760, %v3646_v32 }
 0x14d   :  { %2624 = vmatprep.subr.mxu0 %v3025_v0  ;;  %2667 = vmatprep.subr.mxu1 %v3025_v0 }
 0x14e   :  { %2625 = vmatpush3.msra.mxu0 %v3502_v18  ;;  %2668 = vmatpush3.msra.mxu1 %v3511_v27  ;;  %v1375_v18 = vld [vmem:[%s4268_s5 + $0x78] sm:$0xff] }
 0x14f   :  { %2626 = vmatprep.subr.mxu0 %v3025_v0  ;;  %2669 = vmatprep.subr.mxu1 %v3025_v0 }
 0x150   :  { %2627 = vmatpush3.msra.mxu0 %v3523_v35  ;;  %2670 = vmatpush3.msra.mxu1 %v3514_v28 }
 0x151   :  { %2628 = vmatprep.subr.mxu0 %v3025_v0  ;;  %2671 = vmatprep.subr.mxu1 %v3025_v0 }
 0x152   :  { %2629 = vmatpush3.msra.mxu0 %v3526_v40  ;;  %2672 = vmatpush3.msra.mxu1 %v3516_v29 }
 0x153   :  { %2630 = vmatprep.subr.mxu0 %v3025_v0  ;;  %2673 = vmatprep.subr.mxu1 %v3025_v0 }
 0x154   :  { %2631 = vmatpush3.msra.mxu0 %v3530_v43  ;;  %2674 = vmatpush3.msra.mxu1 %v3559_v19 }
 0x155   :  { %2632 = vmatprep.subr.mxu0 %v3025_v0  ;;  %2675 = vmatprep.subr.mxu1 %v3025_v0 }
 0x156   :  { %2633 = vmatpush3.msra.mxu0 %v3533_v45  ;;  %2676 = vmatpush3.msra.mxu1 %v3591_v2  ;;  %v1370_v45 = vld [vmem:[%s4268_s5 + $0x50] sm:$0xff] }
 0x157   :  { %2634 = vmatprep.subr.mxu0 %v3025_v0  ;;  %2677 = vmatprep.subr.mxu1 %v3025_v0 }
 0x158   :  { %2635 = vmatpush3.msra.mxu0 %v3536_v46  ;;  %2678 = vmatpush3.msra.mxu1 %v3599_v33  ;;  %v1369_v46 = vld [vmem:[%s4268_s5 + $0x48] sm:$0xff] }
 0x159   :  { %2636 = vmatprep.subr.mxu0 %v3025_v0  ;;  %2679 = vmatprep.subr.mxu1 %v3025_v0 }
 0x15a   :  { %2637 = vmatpush3.msra.mxu0 %v3540_v47  ;;  %2680 = vmatpush3.msra.mxu1 %v3608_v51  ;;  %v1368_v47 = vld [vmem:[%s4268_s5 + $0x40] sm:$0xff] }
 0x15b   :  { %2638 = vmatprep.subr.mxu0 %v3025_v0  ;;  %2681 = vmatprep.subr.mxu1 %v3025_v0 }
 0x15c   :  { %2639 = vmatpush3.msra.mxu0 %v3570_v42  ;;  %2682 = vmatpush3.msra.mxu1 %v3620_v16  ;;  %v3911_v42 = vand.u32 4294901760, %v1368_v47 }
 0x15d   :  { %2640 = vmatprep.subr.mxu0 %v3025_v0  ;;  %2683 = vmatprep.subr.mxu1 %v3025_v0 }
 0x15e   :  { %2641 = vmatpush3.msra.mxu0 %v3597_v14  ;;  %2684 = vmatpush3.msra.mxu1 %v3634_v53 }
 0x15f   :  { %2642 = vmatprep.subr.mxu0 %v3025_v0  ;;  %2685 = vmatprep.subr.mxu1 %v3025_v0 }
 0x160   :  { %2643 = vmatpush3.msra.mxu0 %v3606_v50  ;;  %2686 = vmatpush3.msra.mxu1 %v3641_v26 }
 0x161   :  { %2644 = vmatprep.subr.mxu0 %v3025_v0  ;;  %2687 = vmatprep.subr.mxu1 %v3025_v0 }
 0x162   :  { %2645 = vmatpush3.msra.mxu0 %v3618_v15  ;;  %2688 = vmatpush3.msra.mxu1 %v3655_v54 }
 0x163   :  { %2646 = vmatprep.subr.mxu0 %v3025_v0  ;;  %2690 = vmatmul.mubr.f32.vlgmr.msra.gmra.mxu1 %v801_v23  ;;  %v3992_v23 = vand.u32 4294901760, %v1365_v22 }
 0x164   :  { %2727 = vmatprep.subr.mxu1 %v3025_v0  ;;  %2647 = vmatpush3.msra.mxu0 %v3630_v48 }
 0x165   :  { %2728 = vmatpush3.msra.mxu1 %v3491_v5  ;;  %2648 = vmatprep.subr.mxu0 %v3025_v0  ;;  %v4279_v5 = vand.u32 4294901760, %v3630_v48 }
 0x166   :  { %2729 = vmatprep.subr.mxu1 %v3025_v0  ;;  %2649 = vmatpush3.msra.mxu0 %v3646_v32 }
 0x167   :  { %2730 = vmatpush3.msra.mxu1 %v3496_v11  ;;  %2650 = vmatprep.subr.mxu0 %v3025_v0  ;;  %v4281_v11 = vand.u32 4294901760, %v3653_v49 }
 0x168   :  { %2731 = vmatprep.subr.mxu1 %v3025_v0  ;;  %2651 = vmatpush3.msra.mxu0 %v3653_v49 }
 0x169   :  { %2732 = vmatpush3.msra.mxu1 %v3504_v20  ;;  %2652 = vmatprep.subr.mxu0 %v3025_v0  ;;  %v3856_v20 = vand.u32 4294901760, %v1375_v18 }
 0x16a   :  { %2733 = vmatprep.subr.mxu1 %v3025_v0  ;;  %2653 = vmatpush3.msra.mxu0 %v3663_v1 }
 0x16b   :  { %2654 = vmatprep.mubr.msk.f32.mxu0 %vm3026_vm0, %v3025_v0  ;;  %2734 = vmatpush3.msra.mxu1 %v3506_v21  ;;  %v1374_v21 = vld [vmem:[%s4268_s5 + $0x70] sm:$0xff] }
 0x16c   :  { %2655 = vmatmul.mubr.f32.vlgmr.msra.gmra.mxu0 %v3689_v37  ;;  %2692 = vmatprep.subr.mxu0 %v3025_v0  ;;  %v3990_v37 = vsub.f32 %v1366_v9, %v3980_v6 }
 0x16d   :  { %2735 = vmatprep.subr.mxu1 %v3025_v0  ;;  %2693 = vmatpush3.msra.mxu0 %v812_v17  ;;  %v4282_v17 = vand.u32 4294901760, %v3663_v1 }
 0x16e   :  { %2736 = vmatpush3.msra.mxu1 %v3509_v25  ;;  %2694 = vmatprep.subr.mxu0 %v3025_v0  ;;  %v3862_v25 = vsub.f32 %v1375_v18, %v3856_v20 }
 0x16f   :  { %2737 = vmatprep.subr.mxu1 %v3025_v0  ;;  %2695 = vmatpush3.msra.mxu0 %v819_v34  ;;  %v1371_v34 = vld [vmem:[%s4268_s5 + $0x58] sm:$0xff] }
 0x170   :  { %2738 = vmatpush3.msra.mxu1 %v3511_v27  ;;  %2696 = vmatprep.subr.mxu0 %v3025_v0  ;;  %v3864_v27 = vand.u32 4294901760, %v1374_v21  ;;  %v3880_v43 = vand.u32 4294901760, %v1371_v34 }
 0x171   :  { %2739 = vmatprep.subr.mxu1 %v3025_v0  ;;  %2697 = vmatpush3.msra.mxu0 %v826_v57  ;;  %v1471_v57 = vand.u32 4294901760, %v3862_v25 }
 0x172   :  { %2740 = vmatpush3.msra.mxu1 %v3514_v28  ;;  %2698 = vmatprep.subr.mxu0 %v3025_v0  ;;  %v1373_v28 = vld [vmem:[%s4268_s5 + $0x68] sm:$0xff] }
 0x173   :  { %2741 = vmatprep.subr.mxu1 %v3025_v0  ;;  %2699 = vmatpush3.msra.mxu0 %v833_v59  ;;  %v3876_v35 = vand.u32 4294901760, %v1373_v28  ;;  %v3894_v59 = vsub.f32 %v1374_v21, %v3864_v27 }
 0x174   :  { %2742 = vmatpush3.msra.mxu1 %v3516_v29  ;;  %2700 = vmatprep.subr.mxu0 %v3025_v0  ;;  %v1372_v29 = vld [vmem:[%s4268_s5 + $0x60] sm:$0xff] }
 0x175   :  { %2743 = vmatprep.subr.mxu1 %v3025_v0  ;;  %2701 = vmatpush3.msra.mxu0 %v840_v61  ;;  %v3878_v40 = vand.u32 4294901760, %v1372_v29  ;;  %v3897_v61 = vand.u32 4294901760, %v1370_v45 }
 0x176   :  { %2744 = vmatpush3.msra.mxu1 %v3559_v19  ;;  %2702 = vmatprep.subr.mxu0 %v3025_v0 }
 0x177   :  { %2745 = vmatprep.subr.mxu1 %v3025_v0  ;;  %2703 = vmatpush3.msra.mxu0 %v847_v62  ;;  %v3899_v62 = vand.u32 4294901760, %v1369_v46  ;;  %v3905_v19 = vsub.f32 %v1372_v29, %v3878_v40  ;;  %v3918_v14 = vsub.f32 %v1370_v45, %v3897_v61  ;;  %v1362_v45 = vld [vmem:[%s4268_s5 + $0x10] sm:$0xff] }
 0x178   :  { %2746 = vmatpush3.msra.mxu1 %v3591_v2  ;;  %2704 = vmatprep.subr.mxu0 %v3025_v0  ;;  %v1478_v2 = vand.u32 4294901760, %v3894_v59 }
 0x179   :  { %2747 = vmatprep.subr.mxu1 %v3025_v0  ;;  %2705 = vmatpush3.msra.mxu0 %v854_v63  ;;  %v3902_v63 = vsub.f32 %v1373_v28, %v3876_v35  ;;  %v1492_v50 = vand.u32 4294901760, %v3905_v19 }
 0x17a   :  { %2748 = vmatpush3.msra.mxu1 %v3599_v33  ;;  %2706 = vmatprep.subr.mxu0 %v3025_v0  ;;  %v3922_v33 = vsub.f32 %v1369_v46, %v3899_v62  ;;  %v1479_v15 = vsub.f32 %v3894_v59, %v1478_v2 }
 0x17b   :  { %2749 = vmatprep.subr.mxu1 %v3025_v0  ;;  %2707 = vmatpush3.msra.mxu0 %v861_v31  ;;  %v3908_v31 = vsub.f32 %v1371_v34, %v3880_v43 }
 0x17c   :  { %2750 = vmatpush3.msra.mxu1 %v3608_v51  ;;  %2708 = vmatprep.subr.mxu0 %v3025_v0  ;;  %v1513_v49 = vand.u32 4294901760, %v3922_v33 }
 0x17d   :  { %2751 = vmatprep.subr.mxu1 %v3025_v0  ;;  %2709 = vmatpush3.msra.mxu0 %v868_v52  ;;  %v1472_v52 = vsub.f32 %v3862_v25, %v1471_v57  ;;  %v1499_v51 = vand.u32 4294901760, %v3908_v31 }
 0x17e   :  { %2752 = vmatpush3.msra.mxu1 %v3620_v16  ;;  %2710 = vmatprep.subr.mxu0 %v3025_v0  ;;  %v1506_v16 = vand.u32 4294901760, %v3918_v14  ;;  %v1514_v8 = vsub.f32 %v3922_v33, %v1513_v49 }
 0x17f   :  { %2753 = vmatprep.subr.mxu1 %v3025_v0  ;;  %2711 = vmatpush3.msra.mxu0 %v875_v41  ;;  %v1485_v41 = vand.u32 4294901760, %v3902_v63  ;;  %v1500_v32 = vsub.f32 %v3908_v31, %v1499_v51 }
 0x180   :  { %2754 = vmatpush3.msra.mxu1 %v3634_v53  ;;  %2712 = vmatprep.subr.mxu0 %v3025_v0  ;;  %v1493_v53 = vsub.f32 %v3905_v19, %v1492_v50  ;;  %v1507_v1 = vsub.f32 %v3918_v14, %v1506_v16  ;;  %v1515_v39 = vand.u32 4294901760, %v1514_v8 }
 0x181   :  { %2755 = vmatprep.subr.mxu1 %v3025_v0  ;;  %2713 = vmatpush3.msra.mxu0 %v882_v12  ;;  %v1473_v12 = vand.u32 4294901760, %v1472_v52  ;;  %v1486_v48 = vsub.f32 %v3902_v63, %v1485_v41  ;;  %v1501_v55 = vand.u32 4294901760, %v1500_v32 }
 0x182   :  { %2756 = vmatpush3.msra.mxu1 %v3641_v26  ;;  %2714 = vmatprep.subr.mxu0 %v3025_v0  ;;  %v1480_v26 = vand.u32 4294901760, %v1479_v15  ;;  %v1494_v60 = vand.u32 4294901760, %v1493_v53  ;;  %v1508_v44 = vand.u32 4294901760, %v1507_v1  ;;  %v1360_v1 = vld [vmem:[%s4268_s5] sm:$0xff] }
 0x183   :  { %2757 = vmatprep.subr.mxu1 %v3025_v0  ;;  %2715 = vmatpush3.msra.mxu0 %v889_v30  ;;  %v3934_v30 = vsub.f32 %v1368_v47, %v3911_v42 }
 0x184   :  { %2758 = vmatpush3.msra.mxu1 %v3655_v54  ;;  %2759 = vmatprep.mubr.msk.f32.mxu1 %vm3026_vm0, %v3025_v0  ;;  %v1487_v54 = vand.u32 4294901760, %v1486_v48  ;;  %v1361_v48 = vld [vmem:[%s4268_s5 + $0x8] sm:$0xff] }
 0x185   :  { %2716 = vmatprep.subr.mxu0 %v3025_v0  ;;  %2760 = vmatmul.mubr.f32.vlgmr.msra.gmra.mxu1 %v3686_v3  ;;  %v1520_v36 = vand.u32 4294901760, %v3934_v30 }
 0x186   :  { %2717 = vmatpush3.msra.mxu0 %v4279_v5  ;;  %2724 = vmatprep.mubr.msk.f32.mxu0 %vm3026_vm0, %v3025_v0  ;;  %v1534_v5 = vand.u32 4294901760, %v3990_v37 }
 0x187   :  { %2718 = vmatprep.subr.mxu0 %v3025_v0  ;;  %2797 = vmatprep.subr.mxu1 %v3025_v0  ;;  %v1521_v58 = vsub.f32 %v3934_v30, %v1520_v36 }
 0x188   :  { %2719 = vmatpush3.msra.mxu0 %v4280_v10  ;;  %2829 = vmatprep.mubr.msk.f32.mxu1 %vm3026_vm0, %v3025_v0  ;;  %v4005_v10 = vsub.f32 %v1365_v22, %v3992_v23  ;;  %v1535_v21 = vsub.f32 %v3990_v37, %v1534_v5 }
 0x189   :  { %2720 = vmatprep.subr.mxu0 %v3025_v0  ;;  %2798 = vmatpush3.msra.mxu1 %v1473_v12  ;;  %v1522_v24 = vand.u32 4294901760, %v1521_v58  ;;  %v4034_v12 = vand.u32 4294901760, %v1362_v45 }
 0x18a   :  { %2721 = vmatpush3.msra.mxu0 %v4281_v11  ;;  %2799 = vmatprep.subr.mxu1 %v3025_v0  ;;  %v4007_v11 = vand.u32 4294901760, %v1364_v56  ;;  %v1541_v28 = vand.u32 4294901760, %v4005_v10  ;;  %v1536_v46 = vand.u32 4294901760, %v1535_v21 }
 0x18b   :  { %2722 = vmatprep.subr.mxu0 %v3025_v0  ;;  %2800 = vmatpush3.msra.mxu1 %v1480_v26  ;;  %v4048_v32 = vsub.f32 %v1362_v45, %v4034_v12 }
 0x18c   :  { %2723 = vmatpush3.msra.mxu0 %v4282_v17  ;;  %2801 = vmatprep.subr.mxu1 %v3025_v0  ;;  %v1363_v17 = vld [vmem:[%s4268_s5 + $0x18] sm:$0xff]  ;;  %v4020_v29 = vsub.f32 %v1364_v56, %v4007_v11  ;;  %v1542_v47 = vsub.f32 %v4005_v10, %v1541_v28 }
 0x18d   :  { %2725 = vmatmul.mubr.f32.vlgmr.msra.gmra.mxu0 %v3686_v3  ;;  %2762 = vmatprep.subr.mxu0 %v3025_v0  ;;  %v1527_v3 = vand.u32 4294901760, %v3978_v4  ;;  %v4024_v34 = vand.u32 4294901760, %v1363_v17  ;;  %v4277_v8 = vand.u32 4294901760, %v4048_v32 }
 0x18e   :  { %2794 = vmatprep.mubr.msk.f32.mxu0 %vm3026_vm0, %v3025_v0  ;;  %2763 = vmatpush3.msra.mxu0 %v3856_v20  ;;  %v1548_v52 = vand.u32 4294901760, %v4020_v29  ;;  %v1543_v53 = vand.u32 4294901760, %v1542_v47 }
 0x18f   :  { %2764 = vmatprep.subr.mxu0 %v3025_v0  ;;  %2802 = vmatpush3.msra.mxu1 %v1487_v54  ;;  %v1528_v13 = vsub.f32 %v3978_v4, %v1527_v3  ;;  %v4038_v15 = vsub.f32 %v1363_v17, %v4024_v34  ;;  %v4050_v54 = vand.u32 4294901760, %v1361_v48  ;;  %v1563_v9 = vsub.f32 %v4048_v32, %v4277_v8 }
 0x190   :  { %2765 = vmatpush3.msra.mxu0 %v3864_v27  ;;  %2803 = vmatprep.subr.mxu1 %v3025_v0  ;;  %v1549_v26 = vsub.f32 %v4020_v29, %v1548_v52 }
 0x191   :  { %2766 = vmatprep.subr.mxu0 %v3025_v0  ;;  %2804 = vmatpush3.msra.mxu1 %v1494_v60  ;;  %v1529_v18 = vand.u32 4294901760, %v1528_v13  ;;  %v4278_v60 = vand.u32 4294901760, %v4038_v15  ;;  %v4061_v38 = vsub.f32 %v1361_v48, %v4050_v54  ;;  %v1564_v56 = vand.u32 4294901760, %v1563_v9  ;;  %v717_v9 = vld [vmem:[%s4267_s4] sm:$0x1] }
 0x192   :  { %2767 = vmatpush3.msra.mxu0 %v3876_v35  ;;  %2805 = vmatprep.subr.mxu1 %v3025_v0 }
 0x193   :  { %2768 = vmatprep.subr.mxu0 %v3025_v0  ;;  %2806 = vmatpush3.msra.mxu1 %v1501_v55  ;;  %v1550_v55 = vand.u32 4294901760, %v1549_v26  ;;  %v1556_v58 = vsub.f32 %v4038_v15, %v4278_v60 }
 0x194   :  { %2769 = vmatpush3.msra.mxu0 %v3878_v40  ;;  %2807 = vmatprep.subr.mxu1 %v3025_v0 }
 0x195   :  { %2770 = vmatprep.subr.mxu0 %v3025_v0  ;;  %2808 = vmatpush3.msra.mxu1 %v1508_v44  ;;  %v4063_v44 = vand.u32 4294901760, %v1360_v1 }
 0x196   :  { %2771 = vmatpush3.msra.mxu0 %v3880_v43  ;;  %2809 = vmatprep.subr.mxu1 %v3025_v0 }
 0x197   :  { %2772 = vmatprep.subr.mxu0 %v3025_v0  ;;  %2810 = vmatpush3.msra.mxu1 %v1515_v39  ;;  %v4276_v39 = vand.u32 4294901760, %v4061_v38  ;;  %v4076_v22 = vsub.f32 %v1360_v1, %v4063_v44 }
 0x198   :  { %2773 = vmatpush3.msra.mxu0 %v3897_v61  ;;  %2811 = vmatprep.subr.mxu1 %v3025_v0 }
 0x199   :  { %2774 = vmatprep.subr.mxu0 %v3025_v0  ;;  %2812 = vmatpush3.msra.mxu1 %v1522_v24  ;;  %v1557_v24 = vand.u32 4294901760, %v1556_v58  ;;  %v1570_v13 = vsub.f32 %v4061_v38, %v4276_v39  ;;  %v4275_v17 = vand.u32 4294901760, %v4076_v22 }
 0x19a   :  { %2775 = vmatpush3.msra.mxu0 %v3899_v62  ;;  %2813 = vmatprep.subr.mxu1 %v3025_v0 }
 0x19b   :  { %2776 = vmatprep.subr.mxu0 %v3025_v0  ;;  %2814 = vmatpush3.msra.mxu1 %v1529_v18  ;;  %v1571_v18 = vand.u32 4294901760, %v1570_v13  ;;  %v1577_v21 = vsub.f32 %v4076_v22, %v4275_v17 }
 0x19c   :  { %2777 = vmatpush3.msra.mxu0 %v3911_v42  ;;  %2815 = vmatprep.subr.mxu1 %v3025_v0 }
 0x19d   :  { %2778 = vmatprep.subr.mxu0 %v3025_v0  ;;  %2816 = vmatpush3.msra.mxu1 %v1536_v46  ;;  %v1578_v45 = vand.u32 4294901760, %v1577_v21 }
 0x19e   :  { %2779 = vmatpush3.msra.mxu0 %v3969_v7  ;;  %2817 = vmatprep.subr.mxu1 %v3025_v0 }
 0x19f   :  { %2780 = vmatprep.subr.mxu0 %v3025_v0  ;;  %2818 = vmatpush3.msra.mxu1 %v1543_v53 }
 0x1a0   :  { %2781 = vmatpush3.msra.mxu0 %v3980_v6  ;;  %2819 = vmatprep.subr.mxu1 %v3025_v0 }
 0x1a1   :  { %2782 = vmatprep.subr.mxu0 %v3025_v0  ;;  %2820 = vmatpush3.msra.mxu1 %v1550_v55 }
 0x1a2   :  { %2783 = vmatpush3.msra.mxu0 %v3992_v23  ;;  %2821 = vmatprep.subr.mxu1 %v3025_v0 }
 0x1a3   :  { %2784 = vmatprep.subr.mxu0 %v3025_v0  ;;  %2822 = vmatpush3.msra.mxu1 %v1557_v24 }
 0x1a4   :  { %2785 = vmatpush3.msra.mxu0 %v4007_v11  ;;  %2823 = vmatprep.subr.mxu1 %v3025_v0 }
 0x1a5   :  { %2786 = vmatprep.subr.mxu0 %v3025_v0  ;;  %2824 = vmatpush3.msra.mxu1 %v1564_v56 }
 0x1a6   :  { %2787 = vmatpush3.msra.mxu0 %v4024_v34  ;;  %2825 = vmatprep.subr.mxu1 %v3025_v0 }
 0x1a7   :  { %2788 = vmatprep.subr.mxu0 %v3025_v0  ;;  %2826 = vmatpush3.msra.mxu1 %v1571_v18 }
 0x1a8   :  { %2789 = vmatpush3.msra.mxu0 %v4034_v12  ;;  %2827 = vmatprep.subr.mxu1 %v3025_v0 }
 0x1a9   :  { %2790 = vmatprep.subr.mxu0 %v3025_v0  ;;  %2828 = vmatpush3.msra.mxu1 %v1578_v45 }
 0x1aa   :  { %2791 = vmatpush3.msra.mxu0 %v4050_v54  ;;  %2867 = vmatprep.subr.mxu1 %v3025_v0 }
 0x1ab   :  { %2792 = vmatprep.subr.mxu0 %v3025_v0 }
 0x1ac   :  { %2793 = vmatpush3.msra.mxu0 %v4063_v44 }
 0x1ad   :  { %2832 = vmatprep.subr.mxu0 %v3025_v0 }
 0x203   :  { %v956_v46 = vpop.f32.mrf.mxu1 }
 0x205   :  { %v2621_v47 = vpop.f32.mrf.mxu1 }
 0x20b   :  { %v805_v48 = vpop.f32.mrf.mxu0 }
 0x20c   :  { %v806_v24 = vadd.f32 %v805_v48, %v717_v9 }
 0x20d   :  { %v2586_v53 = vpop.f32.mrf.mxu0 }
 0x20e   :  { %v957_v13 = vadd.f32 %v956_v46, %v806_v24 }
 0x223   :  { %v1149_v26 = vpop.f32.mrf.mxu1 }
 0x225   :  { %v2691_v1 = vpop.f32.mrf.mxu1 }
 0x22c   :  { %v1060_v55 = vpop.f32.mrf.mxu0 }
 0x22d   :  { %v1061_v21 = vadd.f32 %v1060_v55, %v957_v13 }
 0x22e   :  { %v2656_v58 = vpop.f32.mrf.mxu0 }
 0x22f   :  { %v1150_v45 = vadd.f32 %v1149_v26, %v1061_v21 }
 0x245   :  { %v1355_v56 = vpop.f32.mrf.mxu1 }
 0x247   :  { %v2761_v18 = vpop.f32.mrf.mxu1 }
 0x24d   :  { %v1268_v17 = vpop.f32.mrf.mxu0 }
 0x24e   :  { %v1269_v39 = vadd.f32 %v1268_v17, %v1150_v45 }
 0x24f   :  { %v2726_v8 = vpop.f32.mrf.mxu0 }
 0x250   :  { %v1356_v47 = vadd.f32 %v1355_v56, %v1269_v39 }
 0x252   :  { %v1359_v60 = vmax.f32 %v1356_v47, 0.0 }
 0x254   :  { %v4096_v53 = vand.u32 4294901760, %v1359_v60 }
 0x256   :  { %v4099_v1 = vsub.f32 %v1359_v60, %v4096_v53  ;;  %2830 = vmatmul.mubr.f32.vlgmr.msra.gmra.mxu1 %v4096_v53 }
 0x257   :  { %2868 = vmatpush3.msra.mxu1 %v3856_v20  ;;  %2899 = vmatprep.mubr.msk.f32.mxu1 %vm3026_vm0, %v3025_v0 }
 0x258   :  { %v1460_v46 = vand.u32 4294901760, %v4099_v1  ;;  %2869 = vmatprep.subr.mxu1 %v3025_v0 }
 0x259   :  { %2870 = vmatpush3.msra.mxu1 %v3864_v27 }
 0x25a   :  { %2871 = vmatprep.subr.mxu1 %v3025_v0  ;;  %v1461_v8 = vsub.f32 %v4099_v1, %v1460_v46 }
 0x25b   :  { %2872 = vmatpush3.msra.mxu1 %v3876_v35 }
 0x25c   :  { %2873 = vmatprep.subr.mxu1 %v3025_v0  ;;  %v1462_v60 = vand.u32 4294901760, %v1461_v8 }
 0x25d   :  { %2874 = vmatpush3.msra.mxu1 %v3878_v40 }
 0x25e   :  { %2875 = vmatprep.subr.mxu1 %v3025_v0  ;;  %2795 = vmatmul.mubr.f32.vlgmr.msra.gmra.mxu0 %v1462_v60 }
 0x25f   :  { %2833 = vmatpush3.msra.mxu0 %v3862_v25  ;;  %2876 = vmatpush3.msra.mxu1 %v3880_v43  ;;  %v4284_v25 = vand.u32 4294901760, %v4048_v32 }
 0x260   :  { %2834 = vmatprep.subr.mxu0 %v3025_v0  ;;  %2877 = vmatprep.subr.mxu1 %v3025_v0 }
 0x261   :  { %2835 = vmatpush3.msra.mxu0 %v3894_v59  ;;  %2878 = vmatpush3.msra.mxu1 %v3897_v61 }
 0x262   :  { %2836 = vmatprep.subr.mxu0 %v3025_v0  ;;  %2879 = vmatprep.subr.mxu1 %v3025_v0 }
 0x263   :  { %2837 = vmatpush3.msra.mxu0 %v3902_v63  ;;  %2880 = vmatpush3.msra.mxu1 %v3899_v62 }
 0x264   :  { %2838 = vmatprep.subr.mxu0 %v3025_v0  ;;  %2881 = vmatprep.subr.mxu1 %v3025_v0 }
 0x265   :  { %2839 = vmatpush3.msra.mxu0 %v3905_v19  ;;  %2882 = vmatpush3.msra.mxu1 %v3911_v42 }
 0x266   :  { %2840 = vmatprep.subr.mxu0 %v3025_v0  ;;  %2883 = vmatprep.subr.mxu1 %v3025_v0 }
 0x267   :  { %2841 = vmatpush3.msra.mxu0 %v3908_v31  ;;  %2884 = vmatpush3.msra.mxu1 %v3969_v7  ;;  %v1376_v31 = vld [vmem:[%s4269_s6] sm:$0x1] }
 0x268   :  { %2842 = vmatprep.subr.mxu0 %v3025_v0  ;;  %2885 = vmatprep.subr.mxu1 %v3025_v0 }
 0x269   :  { %2843 = vmatpush3.msra.mxu0 %v3918_v14  ;;  %2886 = vmatpush3.msra.mxu1 %v3980_v6 }
 0x26a   :  { %2844 = vmatprep.subr.mxu0 %v3025_v0  ;;  %2887 = vmatprep.subr.mxu1 %v3025_v0 }
 0x26b   :  { %2845 = vmatpush3.msra.mxu0 %v3922_v33  ;;  %2888 = vmatpush3.msra.mxu1 %v3992_v23 }
 0x26c   :  { %2846 = vmatprep.subr.mxu0 %v3025_v0  ;;  %2889 = vmatprep.subr.mxu1 %v3025_v0 }
 0x26d   :  { %2847 = vmatpush3.msra.mxu0 %v3934_v30  ;;  %2890 = vmatpush3.msra.mxu1 %v4007_v11 }
 0x26e   :  { %2848 = vmatprep.subr.mxu0 %v3025_v0  ;;  %2891 = vmatprep.subr.mxu1 %v3025_v0 }
 0x26f   :  { %2849 = vmatpush3.msra.mxu0 %v3978_v4  ;;  %2892 = vmatpush3.msra.mxu1 %v4024_v34 }
 0x270   :  { %2850 = vmatprep.subr.mxu0 %v3025_v0  ;;  %2893 = vmatprep.subr.mxu1 %v3025_v0 }
 0x271   :  { %2851 = vmatpush3.msra.mxu0 %v3990_v37  ;;  %2894 = vmatpush3.msra.mxu1 %v4034_v12 }
 0x272   :  { %2852 = vmatprep.subr.mxu0 %v3025_v0  ;;  %2895 = vmatprep.subr.mxu1 %v3025_v0 }
 0x273   :  { %2853 = vmatpush3.msra.mxu0 %v4005_v10  ;;  %2896 = vmatpush3.msra.mxu1 %v4050_v54 }
 0x274   :  { %2854 = vmatprep.subr.mxu0 %v3025_v0  ;;  %2897 = vmatprep.subr.mxu1 %v3025_v0 }
 0x275   :  { %2855 = vmatpush3.msra.mxu0 %v4020_v29  ;;  %2898 = vmatpush3.msra.mxu1 %v4063_v44 }
 0x276   :  { %2856 = vmatprep.subr.mxu0 %v3025_v0  ;;  %2900 = vmatmul.mubr.f32.vlgmr.msra.gmra.mxu1 %v1460_v46 }
 0x277   :  { %2937 = vmatprep.subr.mxu1 %v3025_v0  ;;  %2857 = vmatpush3.msra.mxu0 %v4038_v15 }
 0x278   :  { %2938 = vmatpush3.msra.mxu1 %v3856_v20  ;;  %2858 = vmatprep.subr.mxu0 %v3025_v0  ;;  %v4283_v20 = vand.u32 4294901760, %v4038_v15 }
 0x279   :  { %2939 = vmatprep.subr.mxu1 %v3025_v0  ;;  %2859 = vmatpush3.msra.mxu0 %v4048_v32 }
 0x27a   :  { %2940 = vmatpush3.msra.mxu1 %v3864_v27  ;;  %2860 = vmatprep.subr.mxu0 %v3025_v0  ;;  %v4285_v27 = vand.u32 4294901760, %v4061_v38 }
 0x27b   :  { %2941 = vmatprep.subr.mxu1 %v3025_v0  ;;  %2861 = vmatpush3.msra.mxu0 %v4061_v38 }
 0x27c   :  { %2942 = vmatpush3.msra.mxu1 %v3876_v35  ;;  %2862 = vmatprep.subr.mxu0 %v3025_v0  ;;  %v4286_v35 = vand.u32 4294901760, %v4076_v22 }
 0x27d   :  { %2943 = vmatprep.subr.mxu1 %v3025_v0  ;;  %2863 = vmatpush3.msra.mxu0 %v4076_v22 }
 0x27e   :  { %2864 = vmatprep.mubr.msk.f32.mxu0 %vm3026_vm0, %v3025_v0  ;;  %2944 = vmatpush3.msra.mxu1 %v3878_v40 }
 0x27f   :  { %2865 = vmatmul.mubr.f32.vlgmr.msra.gmra.mxu0 %v4099_v1  ;;  %2902 = vmatprep.subr.mxu0 %v3025_v0 }
 0x280   :  { %2945 = vmatprep.subr.mxu1 %v3025_v0  ;;  %2903 = vmatpush3.msra.mxu0 %v1471_v57 }
 0x281   :  { %2946 = vmatpush3.msra.mxu1 %v3880_v43  ;;  %2904 = vmatprep.subr.mxu0 %v3025_v0 }
 0x282   :  { %2947 = vmatprep.subr.mxu1 %v3025_v0  ;;  %2905 = vmatpush3.msra.mxu0 %v1478_v2 }
 0x283   :  { %2948 = vmatpush3.msra.mxu1 %v3897_v61  ;;  %2906 = vmatprep.subr.mxu0 %v3025_v0 }
 0x284   :  { %2949 = vmatprep.subr.mxu1 %v3025_v0  ;;  %2907 = vmatpush3.msra.mxu0 %v1485_v41 }
 0x285   :  { %2950 = vmatpush3.msra.mxu1 %v3899_v62  ;;  %2908 = vmatprep.subr.mxu0 %v3025_v0 }
 0x286   :  { %2951 = vmatprep.subr.mxu1 %v3025_v0  ;;  %2909 = vmatpush3.msra.mxu0 %v1492_v50 }
 0x287   :  { %2952 = vmatpush3.msra.mxu1 %v3911_v42  ;;  %2910 = vmatprep.subr.mxu0 %v3025_v0 }
 0x288   :  { %2953 = vmatprep.subr.mxu1 %v3025_v0  ;;  %2911 = vmatpush3.msra.mxu0 %v1499_v51 }
 0x289   :  { %2954 = vmatpush3.msra.mxu1 %v3969_v7  ;;  %2912 = vmatprep.subr.mxu0 %v3025_v0 }
 0x28a   :  { %2955 = vmatprep.subr.mxu1 %v3025_v0  ;;  %2913 = vmatpush3.msra.mxu0 %v1506_v16 }
 0x28b   :  { %2956 = vmatpush3.msra.mxu1 %v3980_v6  ;;  %2914 = vmatprep.subr.mxu0 %v3025_v0 }
 0x28c   :  { %2957 = vmatprep.subr.mxu1 %v3025_v0  ;;  %2915 = vmatpush3.msra.mxu0 %v1513_v49 }
 0x28d   :  { %2958 = vmatpush3.msra.mxu1 %v3992_v23  ;;  %2916 = vmatprep.subr.mxu0 %v3025_v0 }
 0x28e   :  { %2959 = vmatprep.subr.mxu1 %v3025_v0  ;;  %2917 = vmatpush3.msra.mxu0 %v1520_v36 }
 0x28f   :  { %2960 = vmatpush3.msra.mxu1 %v4007_v11  ;;  %2918 = vmatprep.subr.mxu0 %v3025_v0 }
 0x290   :  { %2961 = vmatprep.subr.mxu1 %v3025_v0  ;;  %2919 = vmatpush3.msra.mxu0 %v1527_v3 }
 0x291   :  { %2962 = vmatpush3.msra.mxu1 %v4024_v34  ;;  %2920 = vmatprep.subr.mxu0 %v3025_v0 }
 0x292   :  { %2963 = vmatprep.subr.mxu1 %v3025_v0  ;;  %2921 = vmatpush3.msra.mxu0 %v1534_v5 }
 0x293   :  { %2964 = vmatpush3.msra.mxu1 %v4034_v12  ;;  %2922 = vmatprep.subr.mxu0 %v3025_v0 }
 0x294   :  { %2965 = vmatprep.subr.mxu1 %v3025_v0  ;;  %2923 = vmatpush3.msra.mxu0 %v1541_v28 }
 0x295   :  { %2966 = vmatpush3.msra.mxu1 %v4050_v54  ;;  %2924 = vmatprep.subr.mxu0 %v3025_v0 }
 0x296   :  { %2967 = vmatprep.subr.mxu1 %v3025_v0  ;;  %2925 = vmatpush3.msra.mxu0 %v1548_v52 }
 0x297   :  { %2968 = vmatpush3.msra.mxu1 %v4063_v44  ;;  %2969 = vmatprep.mubr.msk.f32.mxu1 %vm3026_vm0, %v3025_v0 }
 0x298   :  { %2926 = vmatprep.subr.mxu0 %v3025_v0  ;;  %2970 = vmatmul.mubr.f32.vlgmr.msra.gmra.mxu1 %v4096_v53 }
 0x299   :  { %2927 = vmatpush3.msra.mxu0 %v4283_v20  ;;  %2934 = vmatprep.mubr.msk.f32.mxu0 %vm3026_vm0, %v3025_v0 }
 0x29a   :  { %2928 = vmatprep.subr.mxu0 %v3025_v0 }
 0x29b   :  { %2929 = vmatpush3.msra.mxu0 %v4284_v25 }
 0x29c   :  { %2930 = vmatprep.subr.mxu0 %v3025_v0 }
 0x29d   :  { %2931 = vmatpush3.msra.mxu0 %v4285_v27 }
 0x29e   :  { %2932 = vmatprep.subr.mxu0 %v3025_v0 }
 0x29f   :  { %2933 = vmatpush3.msra.mxu0 %v4286_v35 }
 0x2a0   :  { %2935 = vmatmul.mubr.f32.vlgmr.msra.gmra.mxu0 %v4096_v53 }
 0x316   :  { %v1615_v40 = vpop.f32.mrf.mxu1 }
 0x318   :  { %v2831_v43 = vpop.f32.mrf.mxu1 }
 0x31e   :  { %v1464_v57 = vpop.f32.mrf.mxu0 }
 0x31f   :  { %v1465_v42 = vadd.f32 %v1464_v57, %v1376_v31 }
 0x320   :  { %v2796_v59 = vpop.f32.mrf.mxu0 }
 0x321   :  { %v1616_v0 = vadd.f32 %v1615_v40, %v1465_v42 }
 0x336   :  { %v1808_v61 = vpop.f32.mrf.mxu1 }
 0x338   :  { %v2901_v62 = vpop.f32.mrf.mxu1 }
 0x33f   :  { %v1719_v63 = vpop.f32.mrf.mxu0 }
 0x340   :  { %v1720_v33 = vadd.f32 %v1719_v63, %v1616_v0 }
 0x341   :  { %v2866_v19 = vpop.f32.mrf.mxu0 }
 0x342   :  { %v1809_v41 = vadd.f32 %v1808_v61, %v1720_v33 }
 0x358   :  { %v2014_v2 = vpop.f32.mrf.mxu1 }
 0x35a   :  { %v2971_v14 = vpop.f32.mrf.mxu1 }
 0x360   :  { %v1927_v50 = vpop.f32.mrf.mxu0 }
 0x361   :  { %v1928_v51 = vadd.f32 %v1927_v50, %v1809_v41 }
 0x362   :  { %v2936_v16 = vpop.f32.mrf.mxu0 }
 0x363   :  { %v2015_v30 = vadd.f32 %v2014_v2, %v1928_v51 }
 0x365   :  { %v2018_v49 = vmax.f32 %v2015_v30, 0.0 }
 0x367   :  { %2020 = vst.msk [vmem:[#allocation5] sm:$0x1] %vm2019_vm1, %v2018_v49 }
 0x368   :  { %3009 = shalt.err (!%p3006_p9)
}
 0x369   :  { %2030 = dma.vmem_to_hbm [thread:$0]  %s2028_s24, 16, %s4270_s7, [#allocation4]  }
 0x36a   :  { %3020 = dma.done.wait [#allocation4], 16  }
 0x36b   :  { %3021 = vsyncadd [#allocation4], 4294967280 }
 0x36c   :  { %2034 = vsyncpa [#allocation3], 1 }
 0x36d   :  { %2035 = vsyncpa [#allocation4], 1 }

</bundles_post_ra>
